<compile_context>
chip_gen: v7x
topology: tpu7x:2x2x1
jax: 0.10.0
libtpu: 0.0.40
codegen_flags: <defaults>
</compile_context>

<pallas_src>
import functools

import jax
import jax.numpy as jnp
from jax.experimental import pallas as pl
from jax.experimental.pallas import tpu as pltpu


def _round_up(x, m):
    return ((x + m - 1) // m) * m


# ---------------------------------------------------------------------------
# Static execution plan (mirrors TiramisuNet.forward exactly)
# ---------------------------------------------------------------------------

def build_plan(in_features, expand_blocks, shrink_blocks, bottleneck_layers, growth):
    """Returns (plan, W_E, W_S, N_total).

    plan[i] = dict(segs, out, n, relu, col):
      segs : ordered input segments [(buffer 'E'|'S', start_col, width), ...]
             matching the row layout of that layer's original (K, n) weight
      out  : ('E'|'S', column offset) where this layer's features are written
             (None for the final linear, which writes the kernel output)
      col  : column offset of this layer inside the packed weight/bias slabs
    """
    assert len(expand_blocks) == len(shrink_blocks), (
        "TiramisuNet requires len(expand_blocks) == len(shrink_blocks)")
    g = growth
    plan, col = [], 0
    skips = [in_features]            # widths of E prefixes (skip connections)
    cur = in_features                # current width of the running concat in E

    for nb in expand_blocks:
        for _ in range(nb):
            plan.append(dict(segs=[("E", 0, cur)], out=("E", cur), n=g,
                             relu=True, col=col))
            col += g
            cur += g
        skips.append(cur)

    bneck_start = cur
    for _ in range(bottleneck_layers):
        plan.append(dict(segs=[("E", 0, cur)], out=("E", cur), n=g,
                         relu=True, col=col))
        col += g
        cur += g
    w_e = cur
    prev = ("E", bneck_start, g * bottleneck_layers)   # most recent new features

    s_off = 0
    for nb in shrink_blocks:
        skip_w = skips.pop()                          # widest remaining skip
        stage_segs = [prev, ("E", 0, skip_w)]
        stage_start = s_off
        for _ in range(nb):
            plan.append(dict(segs=list(stage_segs), out=("S", s_off), n=g,
                             relu=True, col=col))
            col += g
            stage_segs.append(("S", s_off, g))
            s_off += g
        prev = ("S", stage_start, g * nb)

    skip_w = skips.pop()                              # == in_features (the input x)
    plan.append(dict(segs=[prev, ("E", 0, skip_w)], out=None, n=in_features,
                     relu=False, col=col))
    col += in_features

    return plan, w_e, max(s_off, 1), col


# ---------------------------------------------------------------------------
# Host-side parameter packing into zero-padded slabs
# ---------------------------------------------------------------------------

def pack_params(params, plan, w_e_pad, w_s_pad, n_pad, compute_dtype):
    we = jnp.zeros((w_e_pad, n_pad), jnp.float32)
    ws = jnp.zeros((w_s_pad, n_pad), jnp.float32)
    bs = jnp.zeros((1, n_pad), jnp.float32)

    flat = []
    for blk in params["expand"]:
        flat += list(zip(blk["w"], blk["b"]))
    flat += list(zip(params["bottleneck"]["w"], params["bottleneck"]["b"]))
    for blk in params["shrink"]:
        flat += list(zip(blk["w"], blk["b"]))
    flat.append((params["final_w"], params["final_b"]))
    assert len(flat) == len(plan)

    for layer, (w, b) in zip(plan, flat):
        c, n = layer["col"], layer["n"]
        k_total = sum(s[2] for s in layer["segs"])
        assert w.shape == (k_total, n), (w.shape, k_total, n)
        row = 0
        for (buf, start, width) in layer["segs"]:
            block = w[row:row + width, :]
            if buf == "E":
                we = we.at[start:start + width, c:c + n].set(block)
            else:
                ws = ws.at[start:start + width, c:c + n].set(block)
            row += width
        bs = bs.at[0, c:c + n].set(jnp.reshape(b, (-1,)))

    return we.astype(compute_dtype), ws.astype(compute_dtype), bs


# ---------------------------------------------------------------------------
# The fused Pallas kernel
# ---------------------------------------------------------------------------

def _tiramisu_fused_kernel(plan, in_features,
                           x_ref, we_ref, ws_ref, b_ref, o_ref, e_buf, s_buf):
    # Zero the scratch buffers: weight rows outside each layer's valid K are
    # zero, so only NaN/Inf garbage in uninitialized VMEM could corrupt the
    # f32 accumulation -- a cheap full zero-fill removes that hazard.
    e_buf[...] = jnp.zeros_like(e_buf)
    s_buf[...] = jnp.zeros_like(s_buf)
    e_buf[:, 0:in_features] = x_ref[...].astype(e_buf.dtype)

    for layer in plan:                                    # unrolled at trace time
        c, n = layer["col"], layer["n"]
        acc = jnp.dot(e_buf[...], we_ref[:, c:c + n],
                      preferred_element_type=jnp.float32)
        if any(seg[0] == "S" for seg in layer["segs"]):
            acc = acc + jnp.dot(s_buf[...], ws_ref[:, c:c + n],
                                preferred_element_type=jnp.float32)
        acc = acc + b_ref[:, c:c + n]
        if layer["relu"]:
            y = jnp.maximum(acc, 0.0)                     # activation = ReLU
            buf = e_buf if layer["out"][0] == "E" else s_buf
            off = layer["out"][1]
            buf[:, off:off + n] = y.astype(buf.dtype)
        else:
            o_ref[...] = acc.astype(o_ref.dtype)          # final linear (no act)


def tiramisu_forward(x, params, *, in_features, expand_blocks, shrink_blocks,
                     bottleneck_layers, growth_rate,
                     compute_dtype=jnp.bfloat16, batch_tile=None):
    B, d_in = x.shape
    assert d_in == in_features

    plan, w_e, w_s, n_total = build_plan(
        in_features, expand_blocks, shrink_blocks, bottleneck_layers, growth_rate)
    w_e_pad = _round_up(w_e, 128)
    w_s_pad = _round_up(w_s, 128)
    n_pad = _round_up(n_total, 128)

    we, ws, bs = pack_params(params, plan, w_e_pad, w_s_pad, n_pad, compute_dtype)

    tb = batch_tile if batch_tile is not None else min(B, 512)
    if B % tb != 0:
        tb = B
    grid = (B // tb,)

    kernel = functools.partial(_tiramisu_fused_kernel, plan, in_features)
    return pl.pallas_call(
        kernel,
        out_shape=jax.ShapeDtypeStruct((B, in_features), jnp.float32),
        grid_spec=pltpu.PrefetchScalarGridSpec(
            num_scalar_prefetch=0,
            grid=grid,
            in_specs=[
                pl.BlockSpec((tb, in_features), lambda i: (i, 0)),
                pl.BlockSpec((w_e_pad, n_pad), lambda i: (0, 0)),   # resident
                pl.BlockSpec((w_s_pad, n_pad), lambda i: (0, 0)),   # resident
                pl.BlockSpec((1, n_pad), lambda i: (0, 0)),         # resident
            ],
            out_specs=pl.BlockSpec((tb, in_features), lambda i: (i, 0)),
            scratch_shapes=[
                pltpu.VMEM((tb, w_e_pad), compute_dtype),
                pltpu.VMEM((tb, w_s_pad), compute_dtype),
            ],
        ),
        compiler_params=pltpu.CompilerParams(
            dimension_semantics=("parallel",),
            vmem_limit_bytes=32 * 1024 * 1024,
        ),
    )(x, we, ws, bs)


# ---------------------------------------------------------------------------
# Parameter construction (mirrors TiramisuNet.__init__ shapes)
# ---------------------------------------------------------------------------

def init_tiramisu_params(key, in_features, expand_blocks, shrink_blocks,
                         bottleneck_layers, growth_rate):
    def linear(key, d_in, d_out):
        kw, kb = jax.random.split(key)
        bound = 1.0 / float(d_in) ** 0.5
        w = jax.random.uniform(kw, (d_in, d_out), jnp.float32, -bound, bound)
        b = jax.random.uniform(kb, (d_out,), jnp.float32, -bound, bound)
        return w, b

    def dense_block(key, d_in, n_layers):
        ws, bs = [], []
        for i in range(n_layers):
            key, sub = jax.random.split(key)
            w, b = linear(sub, d_in + i * growth_rate, growth_rate)
            ws.append(w)
            bs.append(b)
        return key, {"w": ws, "b": bs}

    params = {"expand": [], "shrink": []}
    cur = in_features
    skip_counts = [in_features]
    for n in expand_blocks:
        key, blk = dense_block(key, cur, n)
        params["expand"].append(blk)
        cur += growth_rate * n
        skip_counts.insert(0, cur)
    key, params["bottleneck"] = dense_block(key, cur, bottleneck_layers)
    prev = growth_rate * bottleneck_layers
    for i, n in enumerate(shrink_blocks):
        cur = prev + skip_counts[i]
        key, blk = dense_block(key, cur, n)
        params["shrink"].append(blk)
        prev = growth_rate * n
    cur = prev + skip_counts[-1]
    key, sub = jax.random.split(key)
    params["final_w"], params["final_b"] = linear(sub, cur, in_features)
    return params


# ---------------------------------------------------------------------------
# Pure-JAX reference (mirrors the PyTorch forward; precision-matched to the
# kernel: bf16 weights / stored activations, f32 accumulation + bias + ReLU)
# ---------------------------------------------------------------------------

def tiramisu_ref(x, params, compute_dtype=jnp.bfloat16):
    cd = compute_dtype

    def dense_block(xcat, ws_list, bs_list):
        feats = []
        for w, b in zip(ws_list, bs_list):
            acc = jnp.dot(xcat, w.astype(cd), preferred_element_type=jnp.float32)
            out = jnp.maximum(acc + b, 0.0).astype(cd)
            xcat = jnp.concatenate([xcat, out], axis=-1)
            feats.append(out)
        return xcat, jnp.concatenate(feats, axis=-1)

    xc = x.astype(cd)
    skips = [xc]
    for blk in params["expand"]:
        xc, _ = dense_block(xc, blk["w"], blk["b"])
        skips.append(xc)
    _, xc = dense_block(skips[-1], params["bottleneck"]["w"], params["bottleneck"]["b"])
    for blk in params["shrink"]:
        skip = skips.pop()
        xc = jnp.concatenate([xc, skip], axis=-1)
        _, xc = dense_block(xc, blk["w"], blk["b"])
    skip = skips.pop()
    xc = jnp.concatenate([xc, skip], axis=-1)
    return jnp.dot(xc, params["final_w"].astype(cd),
                   preferred_element_type=jnp.float32) + params["final_b"]


if __name__ == "__main__":
    in_features = 32
    growth_rate = 16
    expand_blocks = (2, 2)
    shrink_blocks = (2, 2)
    bottleneck_layers = 2
    batch = 8

    key = jax.random.PRNGKey(0)
    kx, kp = jax.random.split(key)
    x = jax.random.normal(kx, (batch, in_features), jnp.float32)
    params = init_tiramisu_params(
        kp, in_features, expand_blocks, shrink_blocks, bottleneck_layers, growth_rate)

    out = tiramisu_forward(
        x, params,
        in_features=in_features, expand_blocks=expand_blocks,
        shrink_blocks=shrink_blocks, bottleneck_layers=bottleneck_layers,
        growth_rate=growth_rate, compute_dtype=jnp.bfloat16)
    out = jax.block_until_ready(out)
    assert out.shape == (batch, in_features), out.shape

    ref = tiramisu_ref(x, params, compute_dtype=jnp.bfloat16)
    err = float(jnp.max(jnp.abs(out - ref)))
    assert err < 1e-3, f"max abs error {err}"
    print("KERNEL_OK")
</pallas_src>

<mosaic_0001>
module attributes {stable_mosaic.version = 11 : i64} {
  func.func @_tiramisu_fused_kernel(%arg0: i32, %arg1: memref<8x32xf32, #tpu.memory_space<vmem>>, %arg2: memref<128x256xbf16, #tpu.memory_space<vmem>>, %arg3: memref<128x256xbf16, #tpu.memory_space<vmem>>, %arg4: memref<1x256xf32, #tpu.memory_space<vmem>>, %arg5: memref<8x32xf32, #tpu.memory_space<vmem>>, %arg6: memref<8x128xbf16, #tpu.memory_space<vmem>>, %arg7: memref<8x128xbf16, #tpu.memory_space<vmem>>) attributes {dimension_semantics = [#tpu.dimension_semantics<parallel>], iteration_bounds = array<i64: 1>, scalar_prefetch = 0 : i64, scratch_operands = 2 : i64, tpu.core_type = #tpu.core_type<tc>, window_params = [{transform_indices = @transform_0, window_bounds = array<i64: 8, 32>}, {pipeline_mode = #tpu.pipeline_mode<synchronous>, transform_indices = @transform_1, window_bounds = array<i64: 128, 256>}, {pipeline_mode = #tpu.pipeline_mode<synchronous>, transform_indices = @transform_2, window_bounds = array<i64: 128, 256>}, {pipeline_mode = #tpu.pipeline_mode<synchronous>, transform_indices = @transform_3, window_bounds = array<i64: 1, 256>}, {transform_indices = @transform_4, window_bounds = array<i64: 8, 32>}]} {
    %cst = arith.constant 0.000000e+00 : bf16
    %0 = vector.broadcast %cst : bf16 to vector<8x128xbf16>
    %c0 = arith.constant 0 : index
    %c0_0 = arith.constant 0 : index
    %1 = vector.load %arg6[%c0, %c0_0] : memref<8x128xbf16, #tpu.memory_space<vmem>>, vector<8x128xbf16>
    tpu.vector_store %arg6[%c0, %c0_0], %0 {strides = array<i32>} : memref<8x128xbf16, #tpu.memory_space<vmem>>, vector<8x128xbf16>,
    %cst_1 = arith.constant 0.000000e+00 : bf16
    %2 = vector.broadcast %cst_1 : bf16 to vector<8x128xbf16>
    %c0_2 = arith.constant 0 : index
    %c0_3 = arith.constant 0 : index
    %3 = vector.load %arg7[%c0_2, %c0_3] : memref<8x128xbf16, #tpu.memory_space<vmem>>, vector<8x128xbf16>
    tpu.vector_store %arg7[%c0_2, %c0_3], %2 {strides = array<i32>} : memref<8x128xbf16, #tpu.memory_space<vmem>>, vector<8x128xbf16>,
    %c0_4 = arith.constant 0 : index
    %c0_5 = arith.constant 0 : index
    %4 = vector.load %arg1[%c0_4, %c0_5] : memref<8x32xf32, #tpu.memory_space<vmem>>, vector<8x32xf32>
    %5 = arith.truncf %4 : vector<8x32xf32> to vector<8x32xbf16>
    %c0_6 = arith.constant 0 : index
    %c0_7 = arith.constant 0 : index
    %6 = vector.load %arg6[%c0_6, %c0_7] : memref<8x128xbf16, #tpu.memory_space<vmem>>, vector<8x32xbf16>
    tpu.vector_store %arg6[%c0_6, %c0_7], %5 {strides = array<i32>} : memref<8x128xbf16, #tpu.memory_space<vmem>>, vector<8x32xbf16>,
    %c0_8 = arith.constant 0 : index
    %c0_9 = arith.constant 0 : index
    %7 = vector.load %arg6[%c0_8, %c0_9] : memref<8x128xbf16, #tpu.memory_space<vmem>>, vector<8x128xbf16>
    %c0_10 = arith.constant 0 : index
    %c0_11 = arith.constant 0 : index
    %8 = vector.load %arg2[%c0_10, %c0_11] : memref<128x256xbf16, #tpu.memory_space<vmem>>, vector<128x16xbf16>
    %cst_12 = arith.constant dense<0.000000e+00> : vector<8x16xf32>
    %9 = tpu.matmul %7, %8, %cst_12 {dimension_numbers = #tpu.dot_dimension_numbers<[1], [0], [0], [1], [0, 0, 1, 1], [], []>} : vector<8x128xbf16>, vector<128x16xbf16>, vector<8x16xf32> -> vector<8x16xf32>
    %c0_13 = arith.constant 0 : index
    %c0_14 = arith.constant 0 : index
    %10 = vector.load %arg4[%c0_13, %c0_14] : memref<1x256xf32, #tpu.memory_space<vmem>>, vector<1x16xf32>
    %11 = vector.broadcast %10 : vector<1x16xf32> to vector<8x16xf32>
    %12 = arith.addf %9, %11 : vector<8x16xf32>
    %cst_15 = arith.constant 0.000000e+00 : f32
    %13 = vector.broadcast %cst_15 : f32 to vector<8x16xf32>
    %14 = arith.maximumf %12, %13 : vector<8x16xf32>
    %15 = arith.truncf %14 : vector<8x16xf32> to vector<8x16xbf16>
    %c0_16 = arith.constant 0 : index
    %c32 = arith.constant 32 : index
    %16 = vector.load %arg6[%c0_16, %c32] : memref<8x128xbf16, #tpu.memory_space<vmem>>, vector<8x16xbf16>
    tpu.vector_store %arg6[%c0_16, %c32], %15 {strides = array<i32>} : memref<8x128xbf16, #tpu.memory_space<vmem>>, vector<8x16xbf16>,
    %c0_17 = arith.constant 0 : index
    %c0_18 = arith.constant 0 : index
    %17 = vector.load %arg6[%c0_17, %c0_18] : memref<8x128xbf16, #tpu.memory_space<vmem>>, vector<8x128xbf16>
    %c0_19 = arith.constant 0 : index
    %c16 = arith.constant 16 : index
    %18 = vector.load %arg2[%c0_19, %c16] : memref<128x256xbf16, #tpu.memory_space<vmem>>, vector<128x16xbf16>
    %cst_20 = arith.constant dense<0.000000e+00> : vector<8x16xf32>
    %19 = tpu.matmul %17, %18, %cst_20 {dimension_numbers = #tpu.dot_dimension_numbers<[1], [0], [0], [1], [0, 0, 1, 1], [], []>} : vector<8x128xbf16>, vector<128x16xbf16>, vector<8x16xf32> -> vector<8x16xf32>
    %c0_21 = arith.constant 0 : index
    %c16_22 = arith.constant 16 : index
    %20 = vector.load %arg4[%c0_21, %c16_22] : memref<1x256xf32, #tpu.memory_space<vmem>>, vector<1x16xf32>
    %21 = vector.broadcast %20 : vector<1x16xf32> to vector<8x16xf32>
    %22 = arith.addf %19, %21 : vector<8x16xf32>
    %cst_23 = arith.constant 0.000000e+00 : f32
    %23 = vector.broadcast %cst_23 : f32 to vector<8x16xf32>
    %24 = arith.maximumf %22, %23 : vector<8x16xf32>
    %25 = arith.truncf %24 : vector<8x16xf32> to vector<8x16xbf16>
    %c0_24 = arith.constant 0 : index
    %c48 = arith.constant 48 : index
    %26 = vector.load %arg6[%c0_24, %c48] : memref<8x128xbf16, #tpu.memory_space<vmem>>, vector<8x16xbf16>
    tpu.vector_store %arg6[%c0_24, %c48], %25 {strides = array<i32>} : memref<8x128xbf16, #tpu.memory_space<vmem>>, vector<8x16xbf16>,
    %c0_25 = arith.constant 0 : index
    %c0_26 = arith.constant 0 : index
    %27 = vector.load %arg6[%c0_25, %c0_26] : memref<8x128xbf16, #tpu.memory_space<vmem>>, vector<8x128xbf16>
    %c0_27 = arith.constant 0 : index
    %c32_28 = arith.constant 32 : index
    %28 = vector.load %arg2[%c0_27, %c32_28] : memref<128x256xbf16, #tpu.memory_space<vmem>>, vector<128x16xbf16>
    %cst_29 = arith.constant dense<0.000000e+00> : vector<8x16xf32>
    %29 = tpu.matmul %27, %28, %cst_29 {dimension_numbers = #tpu.dot_dimension_numbers<[1], [0], [0], [1], [0, 0, 1, 1], [], []>} : vector<8x128xbf16>, vector<128x16xbf16>, vector<8x16xf32> -> vector<8x16xf32>
    %c0_30 = arith.constant 0 : index
    %c32_31 = arith.constant 32 : index
    %30 = vector.load %arg4[%c0_30, %c32_31] : memref<1x256xf32, #tpu.memory_space<vmem>>, vector<1x16xf32>
    %31 = vector.broadcast %30 : vector<1x16xf32> to vector<8x16xf32>
    %32 = arith.addf %29, %31 : vector<8x16xf32>
    %cst_32 = arith.constant 0.000000e+00 : f32
    %33 = vector.broadcast %cst_32 : f32 to vector<8x16xf32>
    %34 = arith.maximumf %32, %33 : vector<8x16xf32>
    %35 = arith.truncf %34 : vector<8x16xf32> to vector<8x16xbf16>
    %c0_33 = arith.constant 0 : index
    %c64 = arith.constant 64 : index
    %36 = vector.load %arg6[%c0_33, %c64] : memref<8x128xbf16, #tpu.memory_space<vmem>>, vector<8x16xbf16>
    tpu.vector_store %arg6[%c0_33, %c64], %35 {strides = array<i32>} : memref<8x128xbf16, #tpu.memory_space<vmem>>, vector<8x16xbf16>,
    %c0_34 = arith.constant 0 : index
    %c0_35 = arith.constant 0 : index
    %37 = vector.load %arg6[%c0_34, %c0_35] : memref<8x128xbf16, #tpu.memory_space<vmem>>, vector<8x128xbf16>
    %c0_36 = arith.constant 0 : index
    %c48_37 = arith.constant 48 : index
    %38 = vector.load %arg2[%c0_36, %c48_37] : memref<128x256xbf16, #tpu.memory_space<vmem>>, vector<128x16xbf16>
    %cst_38 = arith.constant dense<0.000000e+00> : vector<8x16xf32>
    %39 = tpu.matmul %37, %38, %cst_38 {dimension_numbers = #tpu.dot_dimension_numbers<[1], [0], [0], [1], [0, 0, 1, 1], [], []>} : vector<8x128xbf16>, vector<128x16xbf16>, vector<8x16xf32> -> vector<8x16xf32>
    %c0_39 = arith.constant 0 : index
    %c48_40 = arith.constant 48 : index
    %40 = vector.load %arg4[%c0_39, %c48_40] : memref<1x256xf32, #tpu.memory_space<vmem>>, vector<1x16xf32>
    %41 = vector.broadcast %40 : vector<1x16xf32> to vector<8x16xf32>
    %42 = arith.addf %39, %41 : vector<8x16xf32>
    %cst_41 = arith.constant 0.000000e+00 : f32
    %43 = vector.broadcast %cst_41 : f32 to vector<8x16xf32>
    %44 = arith.maximumf %42, %43 : vector<8x16xf32>
    %45 = arith.truncf %44 : vector<8x16xf32> to vector<8x16xbf16>
    %c0_42 = arith.constant 0 : index
    %c80 = arith.constant 80 : index
    %46 = vector.load %arg6[%c0_42, %c80] : memref<8x128xbf16, #tpu.memory_space<vmem>>, vector<8x16xbf16>
    tpu.vector_store %arg6[%c0_42, %c80], %45 {strides = array<i32>} : memref<8x128xbf16, #tpu.memory_space<vmem>>, vector<8x16xbf16>,
    %c0_43 = arith.constant 0 : index
    %c0_44 = arith.constant 0 : index
    %47 = vector.load %arg6[%c0_43, %c0_44] : memref<8x128xbf16, #tpu.memory_space<vmem>>, vector<8x128xbf16>
    %c0_45 = arith.constant 0 : index
    %c64_46 = arith.constant 64 : index
    %48 = vector.load %arg2[%c0_45, %c64_46] : memref<128x256xbf16, #tpu.memory_space<vmem>>, vector<128x16xbf16>
    %cst_47 = arith.constant dense<0.000000e+00> : vector<8x16xf32>
    %49 = tpu.matmul %47, %48, %cst_47 {dimension_numbers = #tpu.dot_dimension_numbers<[1], [0], [0], [1], [0, 0, 1, 1], [], []>} : vector<8x128xbf16>, vector<128x16xbf16>, vector<8x16xf32> -> vector<8x16xf32>
    %c0_48 = arith.constant 0 : index
    %c64_49 = arith.constant 64 : index
    %50 = vector.load %arg4[%c0_48, %c64_49] : memref<1x256xf32, #tpu.memory_space<vmem>>, vector<1x16xf32>
    %51 = vector.broadcast %50 : vector<1x16xf32> to vector<8x16xf32>
    %52 = arith.addf %49, %51 : vector<8x16xf32>
    %cst_50 = arith.constant 0.000000e+00 : f32
    %53 = vector.broadcast %cst_50 : f32 to vector<8x16xf32>
    %54 = arith.maximumf %52, %53 : vector<8x16xf32>
    %55 = arith.truncf %54 : vector<8x16xf32> to vector<8x16xbf16>
    %c0_51 = arith.constant 0 : index
    %c96 = arith.constant 96 : index
    %56 = vector.load %arg6[%c0_51, %c96] : memref<8x128xbf16, #tpu.memory_space<vmem>>, vector<8x16xbf16>
    tpu.vector_store %arg6[%c0_51, %c96], %55 {strides = array<i32>} : memref<8x128xbf16, #tpu.memory_space<vmem>>, vector<8x16xbf16>,
    %c0_52 = arith.constant 0 : index
    %c0_53 = arith.constant 0 : index
    %57 = vector.load %arg6[%c0_52, %c0_53] : memref<8x128xbf16, #tpu.memory_space<vmem>>, vector<8x128xbf16>
    %c0_54 = arith.constant 0 : index
    %c80_55 = arith.constant 80 : index
    %58 = vector.load %arg2[%c0_54, %c80_55] : memref<128x256xbf16, #tpu.memory_space<vmem>>, vector<128x16xbf16>
    %cst_56 = arith.constant dense<0.000000e+00> : vector<8x16xf32>
    %59 = tpu.matmul %57, %58, %cst_56 {dimension_numbers = #tpu.dot_dimension_numbers<[1], [0], [0], [1], [0, 0, 1, 1], [], []>} : vector<8x128xbf16>, vector<128x16xbf16>, vector<8x16xf32> -> vector<8x16xf32>
    %c0_57 = arith.constant 0 : index
    %c80_58 = arith.constant 80 : index
    %60 = vector.load %arg4[%c0_57, %c80_58] : memref<1x256xf32, #tpu.memory_space<vmem>>, vector<1x16xf32>
    %61 = vector.broadcast %60 : vector<1x16xf32> to vector<8x16xf32>
    %62 = arith.addf %59, %61 : vector<8x16xf32>
    %cst_59 = arith.constant 0.000000e+00 : f32
    %63 = vector.broadcast %cst_59 : f32 to vector<8x16xf32>
    %64 = arith.maximumf %62, %63 : vector<8x16xf32>
    %65 = arith.truncf %64 : vector<8x16xf32> to vector<8x16xbf16>
    %c0_60 = arith.constant 0 : index
    %c112 = arith.constant 112 : index
    %66 = vector.load %arg6[%c0_60, %c112] : memref<8x128xbf16, #tpu.memory_space<vmem>>, vector<8x16xbf16>
    tpu.vector_store %arg6[%c0_60, %c112], %65 {strides = array<i32>} : memref<8x128xbf16, #tpu.memory_space<vmem>>, vector<8x16xbf16>,
    %c0_61 = arith.constant 0 : index
    %c0_62 = arith.constant 0 : index
    %67 = vector.load %arg6[%c0_61, %c0_62] : memref<8x128xbf16, #tpu.memory_space<vmem>>, vector<8x128xbf16>
    %c0_63 = arith.constant 0 : index
    %c96_64 = arith.constant 96 : index
    %68 = vector.load %arg2[%c0_63, %c96_64] : memref<128x256xbf16, #tpu.memory_space<vmem>>, vector<128x16xbf16>
    %cst_65 = arith.constant dense<0.000000e+00> : vector<8x16xf32>
    %69 = tpu.matmul %67, %68, %cst_65 {dimension_numbers = #tpu.dot_dimension_numbers<[1], [0], [0], [1], [0, 0, 1, 1], [], []>} : vector<8x128xbf16>, vector<128x16xbf16>, vector<8x16xf32> -> vector<8x16xf32>
    %c0_66 = arith.constant 0 : index
    %c96_67 = arith.constant 96 : index
    %70 = vector.load %arg4[%c0_66, %c96_67] : memref<1x256xf32, #tpu.memory_space<vmem>>, vector<1x16xf32>
    %71 = vector.broadcast %70 : vector<1x16xf32> to vector<8x16xf32>
    %72 = arith.addf %69, %71 : vector<8x16xf32>
    %cst_68 = arith.constant 0.000000e+00 : f32
    %73 = vector.broadcast %cst_68 : f32 to vector<8x16xf32>
    %74 = arith.maximumf %72, %73 : vector<8x16xf32>
    %75 = arith.truncf %74 : vector<8x16xf32> to vector<8x16xbf16>
    %c0_69 = arith.constant 0 : index
    %c0_70 = arith.constant 0 : index
    %76 = vector.load %arg7[%c0_69, %c0_70] : memref<8x128xbf16, #tpu.memory_space<vmem>>, vector<8x16xbf16>
    tpu.vector_store %arg7[%c0_69, %c0_70], %75 {strides = array<i32>} : memref<8x128xbf16, #tpu.memory_space<vmem>>, vector<8x16xbf16>,
    %c0_71 = arith.constant 0 : index
    %c0_72 = arith.constant 0 : index
    %77 = vector.load %arg6[%c0_71, %c0_72] : memref<8x128xbf16, #tpu.memory_space<vmem>>, vector<8x128xbf16>
    %c0_73 = arith.constant 0 : index
    %c112_74 = arith.constant 112 : index
    %78 = vector.load %arg2[%c0_73, %c112_74] : memref<128x256xbf16, #tpu.memory_space<vmem>>, vector<128x16xbf16>
    %cst_75 = arith.constant dense<0.000000e+00> : vector<8x16xf32>
    %79 = tpu.matmul %77, %78, %cst_75 {dimension_numbers = #tpu.dot_dimension_numbers<[1], [0], [0], [1], [0, 0, 1, 1], [], []>} : vector<8x128xbf16>, vector<128x16xbf16>, vector<8x16xf32> -> vector<8x16xf32>
    %c0_76 = arith.constant 0 : index
    %c0_77 = arith.constant 0 : index
    %80 = vector.load %arg7[%c0_76, %c0_77] : memref<8x128xbf16, #tpu.memory_space<vmem>>, vector<8x128xbf16>
    %c0_78 = arith.constant 0 : index
    %c112_79 = arith.constant 112 : index
    %81 = vector.load %arg3[%c0_78, %c112_79] : memref<128x256xbf16, #tpu.memory_space<vmem>>, vector<128x16xbf16>
    %cst_80 = arith.constant dense<0.000000e+00> : vector<8x16xf32>
    %82 = tpu.matmul %80, %81, %cst_80 {dimension_numbers = #tpu.dot_dimension_numbers<[1], [0], [0], [1], [0, 0, 1, 1], [], []>} : vector<8x128xbf16>, vector<128x16xbf16>, vector<8x16xf32> -> vector<8x16xf32>
    %83 = arith.addf %79, %82 : vector<8x16xf32>
    %c0_81 = arith.constant 0 : index
    %c112_82 = arith.constant 112 : index
    %84 = vector.load %arg4[%c0_81, %c112_82] : memref<1x256xf32, #tpu.memory_space<vmem>>, vector<1x16xf32>
    %85 = vector.broadcast %84 : vector<1x16xf32> to vector<8x16xf32>
    %86 = arith.addf %83, %85 : vector<8x16xf32>
    %cst_83 = arith.constant 0.000000e+00 : f32
    %87 = vector.broadcast %cst_83 : f32 to vector<8x16xf32>
    %88 = arith.maximumf %86, %87 : vector<8x16xf32>
    %89 = arith.truncf %88 : vector<8x16xf32> to vector<8x16xbf16>
    %c0_84 = arith.constant 0 : index
    %c16_85 = arith.constant 16 : index
    %90 = vector.load %arg7[%c0_84, %c16_85] : memref<8x128xbf16, #tpu.memory_space<vmem>>, vector<8x16xbf16>
    tpu.vector_store %arg7[%c0_84, %c16_85], %89 {strides = array<i32>} : memref<8x128xbf16, #tpu.memory_space<vmem>>, vector<8x16xbf16>,
    %c0_86 = arith.constant 0 : index
    %c0_87 = arith.constant 0 : index
    %91 = vector.load %arg6[%c0_86, %c0_87] : memref<8x128xbf16, #tpu.memory_space<vmem>>, vector<8x128xbf16>
    %c0_88 = arith.constant 0 : index
    %c128 = arith.constant 128 : index
    %92 = vector.load %arg2[%c0_88, %c128] : memref<128x256xbf16, #tpu.memory_space<vmem>>, vector<128x16xbf16>
    %cst_89 = arith.constant dense<0.000000e+00> : vector<8x16xf32>
    %93 = tpu.matmul %91, %92, %cst_89 {dimension_numbers = #tpu.dot_dimension_numbers<[1], [0], [0], [1], [0, 0, 1, 1], [], []>} : vector<8x128xbf16>, vector<128x16xbf16>, vector<8x16xf32> -> vector<8x16xf32>
    %c0_90 = arith.constant 0 : index
    %c0_91 = arith.constant 0 : index
    %94 = vector.load %arg7[%c0_90, %c0_91] : memref<8x128xbf16, #tpu.memory_space<vmem>>, vector<8x128xbf16>
    %c0_92 = arith.constant 0 : index
    %c128_93 = arith.constant 128 : index
    %95 = vector.load %arg3[%c0_92, %c128_93] : memref<128x256xbf16, #tpu.memory_space<vmem>>, vector<128x16xbf16>
    %cst_94 = arith.constant dense<0.000000e+00> : vector<8x16xf32>
    %96 = tpu.matmul %94, %95, %cst_94 {dimension_numbers = #tpu.dot_dimension_numbers<[1], [0], [0], [1], [0, 0, 1, 1], [], []>} : vector<8x128xbf16>, vector<128x16xbf16>, vector<8x16xf32> -> vector<8x16xf32>
    %97 = arith.addf %93, %96 : vector<8x16xf32>
    %c0_95 = arith.constant 0 : index
    %c128_96 = arith.constant 128 : index
    %98 = vector.load %arg4[%c0_95, %c128_96] : memref<1x256xf32, #tpu.memory_space<vmem>>, vector<1x16xf32>
    %99 = vector.broadcast %98 : vector<1x16xf32> to vector<8x16xf32>
    %100 = arith.addf %97, %99 : vector<8x16xf32>
    %cst_97 = arith.constant 0.000000e+00 : f32
    %101 = vector.broadcast %cst_97 : f32 to vector<8x16xf32>
    %102 = arith.maximumf %100, %101 : vector<8x16xf32>
    %103 = arith.truncf %102 : vector<8x16xf32> to vector<8x16xbf16>
    %c0_98 = arith.constant 0 : index
    %c32_99 = arith.constant 32 : index
    %104 = vector.load %arg7[%c0_98, %c32_99] : memref<8x128xbf16, #tpu.memory_space<vmem>>, vector<8x16xbf16>
    tpu.vector_store %arg7[%c0_98, %c32_99], %103 {strides = array<i32>} : memref<8x128xbf16, #tpu.memory_space<vmem>>, vector<8x16xbf16>,
    %c0_100 = arith.constant 0 : index
    %c0_101 = arith.constant 0 : index
    %105 = vector.load %arg6[%c0_100, %c0_101] : memref<8x128xbf16, #tpu.memory_space<vmem>>, vector<8x128xbf16>
    %c0_102 = arith.constant 0 : index
    %c144 = arith.constant 144 : index
    %106 = vector.load %arg2[%c0_102, %c144] : memref<128x256xbf16, #tpu.memory_space<vmem>>, vector<128x16xbf16>
    %cst_103 = arith.constant dense<0.000000e+00> : vector<8x16xf32>
    %107 = tpu.matmul %105, %106, %cst_103 {dimension_numbers = #tpu.dot_dimension_numbers<[1], [0], [0], [1], [0, 0, 1, 1], [], []>} : vector<8x128xbf16>, vector<128x16xbf16>, vector<8x16xf32> -> vector<8x16xf32>
    %c0_104 = arith.constant 0 : index
    %c0_105 = arith.constant 0 : index
    %108 = vector.load %arg7[%c0_104, %c0_105] : memref<8x128xbf16, #tpu.memory_space<vmem>>, vector<8x128xbf16>
    %c0_106 = arith.constant 0 : index
    %c144_107 = arith.constant 144 : index
    %109 = vector.load %arg3[%c0_106, %c144_107] : memref<128x256xbf16, #tpu.memory_space<vmem>>, vector<128x16xbf16>
    %cst_108 = arith.constant dense<0.000000e+00> : vector<8x16xf32>
    %110 = tpu.matmul %108, %109, %cst_108 {dimension_numbers = #tpu.dot_dimension_numbers<[1], [0], [0], [1], [0, 0, 1, 1], [], []>} : vector<8x128xbf16>, vector<128x16xbf16>, vector<8x16xf32> -> vector<8x16xf32>
    %111 = arith.addf %107, %110 : vector<8x16xf32>
    %c0_109 = arith.constant 0 : index
    %c144_110 = arith.constant 144 : index
    %112 = vector.load %arg4[%c0_109, %c144_110] : memref<1x256xf32, #tpu.memory_space<vmem>>, vector<1x16xf32>
    %113 = vector.broadcast %112 : vector<1x16xf32> to vector<8x16xf32>
    %114 = arith.addf %111, %113 : vector<8x16xf32>
    %cst_111 = arith.constant 0.000000e+00 : f32
    %115 = vector.broadcast %cst_111 : f32 to vector<8x16xf32>
    %116 = arith.maximumf %114, %115 : vector<8x16xf32>
    %117 = arith.truncf %116 : vector<8x16xf32> to vector<8x16xbf16>
    %c0_112 = arith.constant 0 : index
    %c48_113 = arith.constant 48 : index
    %118 = vector.load %arg7[%c0_112, %c48_113] : memref<8x128xbf16, #tpu.memory_space<vmem>>, vector<8x16xbf16>
    tpu.vector_store %arg7[%c0_112, %c48_113], %117 {strides = array<i32>} : memref<8x128xbf16, #tpu.memory_space<vmem>>, vector<8x16xbf16>,
    %c0_114 = arith.constant 0 : index
    %c0_115 = arith.constant 0 : index
    %119 = vector.load %arg6[%c0_114, %c0_115] : memref<8x128xbf16, #tpu.memory_space<vmem>>, vector<8x128xbf16>
    %c0_116 = arith.constant 0 : index
    %c160 = arith.constant 160 : index
    %120 = vector.load %arg2[%c0_116, %c160] : memref<128x256xbf16, #tpu.memory_space<vmem>>, vector<128x32xbf16>
    %cst_117 = arith.constant dense<0.000000e+00> : vector<8x32xf32>
    %121 = tpu.matmul %119, %120, %cst_117 {dimension_numbers = #tpu.dot_dimension_numbers<[1], [0], [0], [1], [0, 0, 1, 1], [], []>} : vector<8x128xbf16>, vector<128x32xbf16>, vector<8x32xf32> -> vector<8x32xf32>
    %c0_118 = arith.constant 0 : index
    %c0_119 = arith.constant 0 : index
    %122 = vector.load %arg7[%c0_118, %c0_119] : memref<8x128xbf16, #tpu.memory_space<vmem>>, vector<8x128xbf16>
    %c0_120 = arith.constant 0 : index
    %c160_121 = arith.constant 160 : index
    %123 = vector.load %arg3[%c0_120, %c160_121] : memref<128x256xbf16, #tpu.memory_space<vmem>>, vector<128x32xbf16>
    %cst_122 = arith.constant dense<0.000000e+00> : vector<8x32xf32>
    %124 = tpu.matmul %122, %123, %cst_122 {dimension_numbers = #tpu.dot_dimension_numbers<[1], [0], [0], [1], [0, 0, 1, 1], [], []>} : vector<8x128xbf16>, vector<128x32xbf16>, vector<8x32xf32> -> vector<8x32xf32>
    %125 = arith.addf %121, %124 : vector<8x32xf32>
    %c0_123 = arith.constant 0 : index
    %c160_124 = arith.constant 160 : index
    %126 = vector.load %arg4[%c0_123, %c160_124] : memref<1x256xf32, #tpu.memory_space<vmem>>, vector<1x32xf32>
    %127 = vector.broadcast %126 : vector<1x32xf32> to vector<8x32xf32>
    %128 = arith.addf %125, %127 : vector<8x32xf32>
    %c0_125 = arith.constant 0 : index
    %c0_126 = arith.constant 0 : index
    %129 = vector.load %arg5[%c0_125, %c0_126] : memref<8x32xf32, #tpu.memory_space<vmem>>, vector<8x32xf32>
    tpu.vector_store %arg5[%c0_125, %c0_126], %128 {strides = array<i32>} : memref<8x32xf32, #tpu.memory_space<vmem>>, vector<8x32xf32>,
    return
  }
  func.func @transform_0(%arg0: i32) -> (i32, i32) {
    %c0_i32 = arith.constant 0 : i32
    %c0_i32_0 = arith.constant 0 : i32
    return %arg0, %c0_i32 : i32, i32
  }
  func.func @transform_1(%arg0: i32) -> (i32, i32) {
    %c0_i32 = arith.constant 0 : i32
    %c0_i32_0 = arith.constant 0 : i32
    %c0_i32_1 = arith.constant 0 : i32
    return %c0_i32, %c0_i32_0 : i32, i32
  }
  func.func @transform_2(%arg0: i32) -> (i32, i32) {
    %c0_i32 = arith.constant 0 : i32
    %c0_i32_0 = arith.constant 0 : i32
    %c0_i32_1 = arith.constant 0 : i32
    return %c0_i32, %c0_i32_0 : i32, i32
  }
  func.func @transform_3(%arg0: i32) -> (i32, i32) {
    %c0_i32 = arith.constant 0 : i32
    %c0_i32_0 = arith.constant 0 : i32
    %c0_i32_1 = arith.constant 0 : i32
    return %c0_i32, %c0_i32_0 : i32, i32
  }
  func.func @transform_4(%arg0: i32) -> (i32, i32) {
    %c0_i32 = arith.constant 0 : i32
    %c0_i32_0 = arith.constant 0 : i32
    return %arg0, %c0_i32 : i32, i32
  }
}

</mosaic_0001>

<bundles_post_ra>
// kernel: tpu_custom_call.1
= control target key start
LH: loop header
LB: loop body
LE: loop exit
PB: predicated region body
PF: predicated region fallthrough
CT: control target
= control target key end

     0   :  { %9 = vsyncpa [#allocation5], 0  ;;  %s3243_s0 = inlined_call_operand.hbm [shape: f32[8,32], index: 0, kind: input, shape index: {}]   ;;  %s3244_s1 = inlined_call_operand.hbm [shape: bf16[128,256], index: 1, kind: input, shape index: {}]   ;;  %s3245_s2 = inlined_call_operand.hbm [shape: bf16[128,256], index: 2, kind: input, shape index: {}]   ;;  %s3246_s3 = inlined_call_operand.vmem [shape: f32[1,256], index: 3, kind: input, shape index: {}]   ;;  %s3247_s4 = inlined_call_operand.hbm [shape: f32[8,32], index: 4, kind: output, shape index: {}]  }
   0x1   :  { %10 = vsyncpa [#allocation8], 0 }
   0x2   :  { %11 = vsyncpa [#allocation6], 0  ;;  %s2854_s15 = smov [#allocation7]   ;;  %s2760_s19 = scalar_lea.hbm %s3244_s1, 2048 }
   0x3   :  { %s27_s16 = sshll.u32 %s2854_s15, 4  ;;  %p2761_p0 = scmp.ne.s32.totalorder %s3244_s1, %s2760_s19  ;;  %s28_s16 = int_to_ptr.vmem [resolvable:$true] %s27_s16 }
   0x4   :  { %p2764_p1 = scmp.lt.u32.totalorder %s2760_s19, %s3244_s1 }
   0x6   :  { %p2766_p2 = pnand %p2764_p1, %p2761_p0 }
   0x8   :  { %2769 = shalt.err (!%p2766_p2)
}
   0x9   :  { %s2770_s24 = scalar_lea.vmem %s28_s16, 2048  ;;  %p2775_p4 = scmp.lt.s32.totalorder %s28_s16, %s28_s16 }
   0xa   :  { %p2771_p3 = scmp.ne.s32.totalorder %s28_s16, %s2770_s24  ;;  %p2776_p5 = scmp.lt.s32.totalorder %s2770_s24, %s2770_s24 }
   0xc   :  { %p2777_p6 = por %p2776_p5, %p2775_p4 }
   0xe   :  { %p2778_p7 = pnand %p2777_p6, %p2771_p3 }
  0x10   :  { %2781 = shalt.err (!%p2778_p7)
}
  0x11   :  { %s2855_s25 = smov 128   ;;  %s2856_s26 = smov 8  }
  0x12   :  { %33 = dma.hbm_to_vmem [thread:$0]  %s3244_s1, 2048, %s28_s16, [#allocation8], %s2855_s25, %s2855_s25, %s2856_s26  }
  0x13   :  { %s2857_s29 = smov [#allocation4]   ;;  %s2858_s5 = smov [#allocation9]  }
  0x14   :  { %s18_s30 = sshll.u32 %s2857_s29, 4  ;;  %s39_s6 = sshll.u32 %s2858_s5, 4  ;;  %s19_s30 = int_to_ptr.vmem [resolvable:$true] %s18_s30  ;;  %s40_s6 = int_to_ptr.vmem [resolvable:$true] %s39_s6 }
  0x15   :  { %s2782_s9 = scalar_lea.hbm %s3243_s0, 128 }
  0x16   :  { %p2783_p8 = scmp.ne.s32.totalorder %s3243_s0, %s2782_s9  ;;  %p2786_p9 = scmp.lt.u32.totalorder %s2782_s9, %s3243_s0 }
  0x18   :  { %p2788_p10 = pnand %p2786_p9, %p2783_p8 }
  0x1a   :  { %2791 = shalt.err (!%p2788_p10)
}
  0x1b   :  { %s2792_s1 = scalar_lea.vmem %s19_s30, 128  ;;  %p2797_p12 = scmp.lt.s32.totalorder %s19_s30, %s19_s30 }
  0x1c   :  { %p2793_p11 = scmp.ne.s32.totalorder %s19_s30, %s2792_s1  ;;  %p2798_p13 = scmp.lt.s32.totalorder %s2792_s1, %s2792_s1 }
  0x1e   :  { %p2799_p0 = por %p2798_p13, %p2797_p12 }
  0x20   :  { %p2800_p1 = pnand %p2799_p0, %p2793_p11 }
  0x22   :  { %2803 = shalt.err (!%p2800_p1)
}
  0x23   :  { %21 = dma.hbm_to_vmem [thread:$0]  %s3243_s0, 128, %s19_s30, [#allocation5]  }
  0x24   :  { %s2804_s18 = scalar_lea.hbm %s3245_s2, 2048 }
  0x25   :  { %p2805_p2 = scmp.ne.s32.totalorder %s3245_s2, %s2804_s18  ;;  %p2808_p3 = scmp.lt.u32.totalorder %s2804_s18, %s3245_s2 }
  0x27   :  { %p2810_p4 = pnand %p2808_p3, %p2805_p2 }
  0x29   :  { %2813 = shalt.err (!%p2810_p4)
}
  0x2a   :  { %s2814_s23 = scalar_lea.vmem %s40_s6, 2048  ;;  %p2819_p6 = scmp.lt.s32.totalorder %s40_s6, %s40_s6 }
  0x2b   :  { %p2815_p5 = scmp.ne.s32.totalorder %s40_s6, %s2814_s23  ;;  %p2820_p7 = scmp.lt.s32.totalorder %s2814_s23, %s2814_s23 }
  0x2d   :  { %p2821_p8 = por %p2820_p7, %p2819_p6 }
  0x2f   :  { %p2822_p9 = pnand %p2821_p8, %p2815_p5 }
  0x31   :  { %2825 = shalt.err (!%p2822_p9)
}
  0x32   :  { %45 = dma.hbm_to_vmem [thread:$0]  %s3245_s2, 2048, %s40_s6, [#allocation8], %s2855_s25, %s2855_s25, %s2856_s26  }
  0x33   :  { %2848 = dma.done.wait [#allocation5], 128  }
  0x34   :  { %2849 = vsyncadd [#allocation5], 4294967168 }
  0x35   :  { %2850 = dma.done.wait [#allocation8], 4096  }
  0x36   :  { %2851 = vsyncadd [#allocation8], 4294963200  ;;  %v2859_v0 = vmov 0.0   ;;  %vm2860_vm0 = vmmov 0   ;;  %v2861_v1 = vmov 0   ;;  %vm62_vm1 = vcmask 257024  }
  0x37   :  { %2324 = vmatprep.subr.bf16.mxu0 %v2859_v0  ;;  %2340 = vmatprep.mubr.msk.bf16.mxu0 %vm2860_vm0, %v2859_v0  ;;  %58 = vst [vmem:[#allocation2] sm:$0xf] %v2861_v1  ;;  %59 = vst [vmem:[#allocation3] sm:$0xf] %v2861_v1  ;;  %v2640_v2 = vld [vmem:[#allocation7] ss:$8 sps:$4 sm:$0xff]  }
  0x38   :  { %2344 = vmatprep.subr.bf16.mxu1 %v2859_v0  ;;  %2360 = vmatprep.mubr.msk.bf16.mxu1 %vm2860_vm0, %v2859_v0  ;;  %v2641_v3 = vld [vmem:[#allocation7 + $0x10] ss:$8 sps:$4 sm:$0xff]   ;;  %v2642_v4 = vld [vmem:[#allocation7 + $0x20] ss:$8 sps:$4 sm:$0xff]   ;;  %s2862_s2 = smov 112   ;;  %s2863_s27 = smov 96  }
  0x39   :  { %2325 = vmatpush3.bf16.msra.mxu0 %v2640_v2  ;;  %v2643_v5 = vld [vmem:[#allocation7 + $0x30] ss:$8 sps:$4 sm:$0xff]   ;;  %v2648_v8 = vld [vmem:[#allocation7] ss:$8 sps:$4 sm:$0xff]   ;;  %s2864_s28 = smov 32   ;;  %vm184_vm2 = vcmask 388352  }
  0x3a   :  { %2326 = vmatprep.subr.bf16.mxu0 %v2859_v0  ;;  %v60_v6 = vld [vmem:[#allocation4] sm:$0xff]  ;;  %249 = vrot.lane.b32.xlu0 %v2648_v8, %s2862_s2  ;;  %v2650_v10 = vld [vmem:[#allocation7 + $0x20] ss:$8 sps:$4 sm:$0xff]   ;;  %v2963_v20 = vld [vmem:[%s3246_s3] ss:$0 sm:$0xff]  ;;  %s2865_s29 = smov 80  }
  0x3b   :  { %v61_v7 = vpack.c.bf16 %v60_v6, %v60_v6  ;;  %v2649_v9 = vld [vmem:[#allocation7 + $0x10] ss:$8 sps:$4 sm:$0xff]   ;;  %v2644_v11 = vld [vmem:[#allocation7 + $0x40] ss:$8 sps:$4 sm:$0xff]   ;;  %253 = vrot.lane.b32.xlu1 %v2650_v10, %s2862_s2  ;;  %s2866_s30 = smov 48   ;;  %vm324_vm3 = vcmask 519552  }
  0x3c   :  { %v2651_v12 = vld [vmem:[#allocation7 + $0x30] ss:$8 sps:$4 sm:$0xff]   ;;  %v2652_v13 = vld [vmem:[#allocation7 + $0x40] ss:$8 sps:$4 sm:$0xff]   ;;  %s2867_s5 = smov 64   ;;  %vm464_vm4 = vcmask 650752  }
  0x3d   :  { %2327 = vmatpush3.bf16.msra.mxu0 %v2641_v3  ;;  %63 = vst.msk [vmem:[#allocation2] sm:$0xf] %vm62_vm1, %v61_v7  ;;  %v2645_v14 = vld [vmem:[#allocation7 + $0x50] ss:$8 sps:$4 sm:$0xff]   ;;  %v2646_v15 = vld [vmem:[#allocation7 + $0x60] ss:$8 sps:$4 sm:$0xff]  }
  0x3e   :  { %2328 = vmatprep.subr.bf16.mxu0 %v2859_v0  ;;  %251 = vrot.lane.b32.xlu0 %v2649_v9, %s2862_s2  ;;  %v2647_v16 = vld [vmem:[#allocation7 + $0x70] ss:$8 sps:$4 sm:$0xff]   ;;  %v2654_v19 = vld [vmem:[#allocation7 + $0x60] ss:$8 sps:$4 sm:$0xff]   ;;  %vm604_vm5 = vcmask 781952   ;;  %vm744_vm6 = vcmask 913152  }
  0x3f   :  { %255 = vrot.lane.b32.xlu1 %v2651_v12, %s2862_s2  ;;  %v2653_v18 = vld [vmem:[#allocation7 + $0x50] ss:$8 sps:$4 sm:$0xff]   ;;  %v2656_v38 = vld [vmem:[#allocation7] ss:$8 sps:$4 sm:$0xff]   ;;  %s2868_s6 = smov 16   ;;  %vm884_vm7 = vcmask 1044352  }
  0x40   :  { %v2657_v32 = vld [vmem:[#allocation7 + $0x10] ss:$8 sps:$4 sm:$0xff]   ;;  %v2658_v39 = vld [vmem:[#allocation7 + $0x20] ss:$8 sps:$4 sm:$0xff]   ;;  %vm1018_vm8 = vcmask 125952   ;;  %vm1280_vm9 = vcmask 257152  }
  0x41   :  { %2329 = vmatpush3.bf16.msra.mxu0 %v2642_v4  ;;  %v2659_v35 = vld [vmem:[#allocation7 + $0x30] ss:$8 sps:$4 sm:$0xff]   ;;  %v2660_v40 = vld [vmem:[#allocation7 + $0x40] ss:$8 sps:$4 sm:$0xff]   ;;  %vm2022_vm10 = vcmask 261120  }
  0x42   :  { %2330 = vmatprep.subr.bf16.mxu0 %v2859_v0  ;;  %257 = vrot.lane.b32.xlu0 %v2652_v13, %s2862_s2  ;;  %v2655_v37 = vld [vmem:[#allocation7 + $0x70] ss:$8 sps:$4 sm:$0xff]   ;;  %v2662_v45 = vld [vmem:[#allocation7 + $0x60] ss:$8 sps:$4 sm:$0xff]  }
  0x43   :  { %259 = vrot.lane.b32.xlu1 %v2653_v18, %s2862_s2  ;;  %v2661_v44 = vld [vmem:[#allocation7 + $0x50] ss:$8 sps:$4 sm:$0xff]   ;;  %v2664_v1 = vld [vmem:[#allocation7] ss:$8 sps:$4 sm:$0xff]  }
  0x44   :  { %v64_v17 = vld [vmem:[#allocation2] sm:$0xf]  ;;  %v2666_v2 = vld [vmem:[#allocation7 + $0x20] ss:$8 sps:$4 sm:$0xff]  }
  0x45   :  { %2331 = vmatpush3.bf16.msra.mxu0 %v2643_v5  ;;  %v2665_v58 = vld [vmem:[#allocation7 + $0x10] ss:$8 sps:$4 sm:$0xff]   ;;  %v2668_v3 = vld [vmem:[#allocation7 + $0x40] ss:$8 sps:$4 sm:$0xff]  }
  0x46   :  { %2332 = vmatprep.subr.bf16.mxu0 %v2859_v0  ;;  %v2667_v61 = vld [vmem:[#allocation7 + $0x30] ss:$8 sps:$4 sm:$0xff]   ;;  %v2670_v8 = vld [vmem:[#allocation7 + $0x60] ss:$8 sps:$4 sm:$0xff]  }
  0x47   :  { %261 = vrot.lane.b32.xlu1 %v2654_v19, %s2862_s2  ;;  %v2663_v63 = vld [vmem:[#allocation7 + $0x70] ss:$8 sps:$4 sm:$0xff]  }
  0x48   :  { %v2669_v7 = vld [vmem:[#allocation7 + $0x50] ss:$8 sps:$4 sm:$0xff]  }
  0x49   :  { %2333 = vmatpush3.bf16.msra.mxu0 %v2644_v11 }
  0x4a   :  { %2334 = vmatprep.subr.bf16.mxu0 %v2859_v0 }
  0x4b   :  { %273 = vrot.lane.b32.xlu1 %v2963_v20, %s2862_s2 }
  0x4d   :  { %2335 = vmatpush3.bf16.msra.mxu0 %v2645_v14 }
  0x4e   :  { %2336 = vmatprep.subr.bf16.mxu0 %v2859_v0 }
  0x4f   :  { %391 = vrot.lane.b32.xlu1 %v2657_v32, %s2863_s27 }
  0x51   :  { %2337 = vmatpush3.bf16.msra.mxu0 %v2646_v15 }
  0x52   :  { %2338 = vmatprep.subr.bf16.mxu0 %v2859_v0 }
  0x53   :  { %395 = vrot.lane.b32.xlu1 %v2659_v35, %s2863_s27  ;;  %v2678_v35 = vld [vmem:[#allocation7 + $0x60] ss:$8 sps:$4 sm:$0xff]  }
  0x55   :  { %2339 = vmatpush3.bf16.msra.mxu0 %v2647_v16 }
  0x56   :  { %2364 = vmatprep.subr.bf16.mxu0 %v2859_v0 }
  0x57   :  { %399 = vrot.lane.b32.xlu1 %v2661_v44, %s2863_s27 }
  0x58   :  { %2341 = vmatmul.mubr.bf16.vlgmr.msra.gmra.mrb[0].mxu0 %v64_v17 }
  0x59   :  { %2380 = vmatprep.mubr.msk.bf16.mxu0 %vm2860_vm0, %v2859_v0 }
  0x5b   :  { %401 = vrot.lane.b32.xlu1 %v2662_v45, %s2863_s27 }
  0x5f   :  { %413 = vrot.lane.b32.xlu1 %v2963_v20, %s2863_s27 }
  0x63   :  { %531 = vrot.lane.b32.xlu1 %v2665_v58, %s2865_s29 }
  0x67   :  { %535 = vrot.lane.b32.xlu1 %v2667_v61, %s2865_s29  ;;  %v2686_v61 = vld [vmem:[#allocation7 + $0x60] ss:$8 sps:$4 sm:$0xff]  }
  0x6b   :  { %539 = vrot.lane.b32.xlu1 %v2669_v7, %s2865_s29 }
  0x6f   :  { %541 = vrot.lane.b32.xlu1 %v2670_v8, %s2865_s29 }
  0x73   :  { %553 = vrot.lane.b32.xlu1 %v2963_v20, %s2865_s29 }
  0xac   :  { %v250_v21 = vpop.permute.xlu0 %249 }
  0xad   :  { %2345 = vmatpush3.bf16.msra.mxu1 %v250_v21  ;;  %v254_v23 = vpop.permute.xlu1 %253 }
  0xae   :  { %2346 = vmatprep.subr.bf16.mxu1 %v2859_v0 }
  0xb0   :  { %v252_v22 = vpop.permute.xlu0 %251 }
  0xb1   :  { %2347 = vmatpush3.bf16.msra.mxu1 %v252_v22  ;;  %v256_v24 = vpop.permute.xlu1 %255  ;;  %v2673_v22 = vld [vmem:[#allocation7 + $0x10] ss:$8 sps:$4 sm:$0xff]  }
  0xb2   :  { %2348 = vmatprep.subr.bf16.mxu1 %v2859_v0  ;;  %671 = vrot.lane.b32.xlu1 %v2673_v22, %s2867_s5 }
  0xb4   :  { %v258_v25 = vpop.permute.xlu0 %257 }
  0xb5   :  { %2349 = vmatpush3.bf16.msra.mxu1 %v254_v23  ;;  %v260_v26 = vpop.permute.xlu1 %259 }
  0xb6   :  { %2350 = vmatprep.subr.bf16.mxu1 %v2859_v0 }
  0xb9   :  { %2351 = vmatpush3.bf16.msra.mxu1 %v256_v24  ;;  %v262_v27 = vpop.permute.xlu1 %261 }
  0xba   :  { %2352 = vmatprep.subr.bf16.mxu1 %v2859_v0 }
  0xbd   :  { %2353 = vmatpush3.bf16.msra.mxu1 %v258_v25  ;;  %v274_v46 = vpop.permute.xlu1 %273  ;;  %v2675_v25 = vld [vmem:[#allocation7 + $0x30] ss:$8 sps:$4 sm:$0xff]  }
  0xbe   :  { %2354 = vmatprep.subr.bf16.mxu1 %v2859_v0  ;;  %675 = vrot.lane.b32.xlu1 %v2675_v25, %s2867_s5  ;;  %v2694_v25 = vld [vmem:[#allocation7 + $0x60] ss:$8 sps:$4 sm:$0xff]  }
  0xc1   :  { %2355 = vmatpush3.bf16.msra.mxu1 %v260_v26  ;;  %v392_v48 = vpop.permute.xlu1 %391 }
  0xc2   :  { %2356 = vmatprep.subr.bf16.mxu1 %v2859_v0 }
  0xc5   :  { %2357 = vmatpush3.bf16.msra.mxu1 %v262_v27  ;;  %v396_v50 = vpop.permute.xlu1 %395  ;;  %v2671_v27 = vld [vmem:[#allocation7 + $0x70] ss:$8 sps:$4 sm:$0xff]  }
  0xc6   :  { %2358 = vmatprep.subr.bf16.mxu1 %v2859_v0 }
  0xc9   :  { %v400_v52 = vpop.permute.xlu1 %399 }
  0xcd   :  { %v402_v53 = vpop.permute.xlu1 %401 }
  0xd1   :  { %v414_v9 = vpop.permute.xlu1 %413 }
  0xd5   :  { %v532_v11 = vpop.permute.xlu1 %531 }
  0xd9   :  { %v536_v13 = vpop.permute.xlu1 %535 }
  0xdd   :  { %v540_v15 = vpop.permute.xlu1 %539 }
  0xe1   :  { %v542_v16 = vpop.permute.xlu1 %541 }
 0x12b   :  { %v170_v28 = vpop.f32.mrb[0].mxu0 }
 0x12c   :  { %v171_v29 = vadd.f32 %v2963_v20, %v170_v28  ;;  %v2342_v30 = vpop.f32.mrb[1].mxu0  ;;  %v2672_v28 = vld [vmem:[#allocation7] ss:$8 sps:$4 sm:$0xff]  }
 0x12d   :  { %v173_v31 = vpop.f32.mrb[2].mxu0  ;;  %v2676_v30 = vld [vmem:[#allocation7 + $0x40] ss:$8 sps:$4 sm:$0xff]  }
 0x12e   :  { %v176_v33 = vmax.f32 %v171_v29, 0.0  ;;  %v2343_v34 = vpop.f32.mrb[3].mxu0  ;;  %v2674_v29 = vld [vmem:[#allocation7 + $0x20] ss:$8 sps:$4 sm:$0xff]  }
 0x12f   :  { %v2677_v34 = vld [vmem:[#allocation7 + $0x50] ss:$8 sps:$4 sm:$0xff]  }
 0x130   :  { %v2180_v36 = vpack.c.bf16 %v176_v33, %v176_v33  ;;  %679 = vrot.lane.b32.xlu1 %v2677_v34, %s2867_s5 }
 0x132   :  { %181 = vrot.lane.b32.xlu0 %v2180_v36, %s2864_s28  ;;  %v554_v36 = vpop.permute.xlu1 %553 }
 0x134   :  { %681 = vrot.lane.b32.xlu1 %v2678_v35, %s2867_s5  ;;  %v2707_v35 = vld [vmem:[#allocation7 + $0x60] ss:$8 sps:$4 sm:$0xff]  }
 0x136   :  { %263 = vrot.lane.b32.xlu0 %v2655_v37, %s2862_s2 }
 0x138   :  { %693 = vrot.lane.b32.xlu1 %v2963_v20, %s2867_s5 }
 0x13a   :  { %389 = vrot.lane.b32.xlu0 %v2656_v38, %s2863_s27  ;;  %v672_v38 = vpop.permute.xlu1 %671 }
 0x13e   :  { %393 = vrot.lane.b32.xlu0 %v2658_v39, %s2863_s27 }
 0x142   :  { %397 = vrot.lane.b32.xlu0 %v2660_v40, %s2863_s27  ;;  %v676_v40 = vpop.permute.xlu1 %675 }
 0x1a4   :  { %v182_v41 = vpop.permute.xlu0 %181 }
 0x1a5   :  { %185 = vst.msk [vmem:[#allocation2] sm:$0xf] %vm184_vm2, %v182_v41 }
 0x1a8   :  { %v264_v42 = vpop.permute.xlu0 %263 }
 0x1a9   :  { %2359 = vmatpush3.bf16.msra.mxu1 %v264_v42  ;;  %v680_v42 = vpop.permute.xlu1 %679 }
 0x1aa   :  { %2384 = vmatprep.subr.bf16.mxu1 %v2859_v0 }
 0x1ac   :  { %v186_v43 = vld [vmem:[#allocation2] sm:$0xf]  ;;  %v390_v47 = vpop.permute.xlu0 %389 }
 0x1ad   :  { %2361 = vmatmul.mubr.bf16.vlgmr.msra.gmra.mrb[0].mxu1 %v186_v43  ;;  %2365 = vmatpush3.bf16.msra.mxu0 %v390_v47  ;;  %v682_v43 = vpop.permute.xlu1 %681 }
 0x1ae   :  { %2400 = vmatprep.mubr.msk.bf16.mxu1 %vm2860_vm0, %v2859_v0  ;;  %2366 = vmatprep.subr.bf16.mxu0 %v2859_v0 }
 0x1b0   :  { %v394_v49 = vpop.permute.xlu0 %393 }
 0x1b1   :  { %2367 = vmatpush3.bf16.msra.mxu0 %v392_v48  ;;  %v2681_v48 = vld [vmem:[#allocation7 + $0x10] ss:$8 sps:$4 sm:$0xff]  }
 0x1b2   :  { %2368 = vmatprep.subr.bf16.mxu0 %v2859_v0  ;;  %811 = vrot.lane.b32.xlu1 %v2681_v48, %s2866_s30 }
 0x1b4   :  { %v398_v51 = vpop.permute.xlu0 %397 }
 0x1b5   :  { %2369 = vmatpush3.bf16.msra.mxu0 %v394_v49 }
 0x1b6   :  { %2370 = vmatprep.subr.bf16.mxu0 %v2859_v0 }
 0x1b9   :  { %2371 = vmatpush3.bf16.msra.mxu0 %v396_v50 }
 0x1ba   :  { %2372 = vmatprep.subr.bf16.mxu0 %v2859_v0 }
 0x1bd   :  { %2373 = vmatpush3.bf16.msra.mxu0 %v398_v51  ;;  %v2683_v51 = vld [vmem:[#allocation7 + $0x30] ss:$8 sps:$4 sm:$0xff]  }
 0x1be   :  { %2374 = vmatprep.subr.bf16.mxu0 %v2859_v0  ;;  %815 = vrot.lane.b32.xlu1 %v2683_v51, %s2866_s30  ;;  %v2696_v51 = vld [vmem:[#allocation7 + $0x70] ss:$8 sps:$4 sm:$0xff]  }
 0x1c1   :  { %2375 = vmatpush3.bf16.msra.mxu0 %v400_v52 }
 0x1c2   :  { %2376 = vmatprep.subr.bf16.mxu0 %v2859_v0 }
 0x1c5   :  { %2377 = vmatpush3.bf16.msra.mxu0 %v402_v53  ;;  %v2679_v53 = vld [vmem:[#allocation7 + $0x70] ss:$8 sps:$4 sm:$0xff]  }
 0x1c6   :  { %2378 = vmatprep.subr.bf16.mxu0 %v2859_v0 }
 0x280   :  { %v310_v54 = vpop.f32.mrb[0].mxu1 }
 0x281   :  { %v311_v55 = vadd.f32 %v310_v54, %v274_v46  ;;  %v2362_v56 = vpop.f32.mrb[1].mxu1  ;;  %v2680_v54 = vld [vmem:[#allocation7] ss:$8 sps:$4 sm:$0xff]  }
 0x282   :  { %v313_v57 = vpop.f32.mrb[2].mxu1  ;;  %v2684_v56 = vld [vmem:[#allocation7 + $0x40] ss:$8 sps:$4 sm:$0xff]  }
 0x283   :  { %v316_v59 = vmax.f32 %v311_v55, 0.0  ;;  %v2363_v60 = vpop.f32.mrb[3].mxu1  ;;  %v2682_v55 = vld [vmem:[#allocation7 + $0x20] ss:$8 sps:$4 sm:$0xff]  }
 0x284   :  { %v2685_v60 = vld [vmem:[#allocation7 + $0x50] ss:$8 sps:$4 sm:$0xff]  }
 0x285   :  { %v2181_v62 = vpack.c.bf16 %v316_v59, %v316_v59  ;;  %819 = vrot.lane.b32.xlu1 %v2685_v60, %s2866_s30  ;;  %v2718_v60 = vld [vmem:[#allocation9 + $0x60] ss:$8 sps:$4 sm:$0xff]  }
 0x287   :  { %321 = vrot.lane.b32.xlu0 %v2181_v62, %s2866_s30  ;;  %v694_v62 = vpop.permute.xlu1 %693 }
 0x289   :  { %821 = vrot.lane.b32.xlu1 %v2686_v61, %s2866_s30  ;;  %v2719_v61 = vld [vmem:[#allocation9 + $0x70] ss:$8 sps:$4 sm:$0xff]  }
 0x28b   :  { %403 = vrot.lane.b32.xlu0 %v2663_v63, %s2863_s27 }
 0x28d   :  { %833 = vrot.lane.b32.xlu1 %v2963_v20, %s2866_s30 }
 0x28f   :  { %529 = vrot.lane.b32.xlu0 %v2664_v1, %s2865_s29  ;;  %v812_v1 = vpop.permute.xlu1 %811 }
 0x293   :  { %533 = vrot.lane.b32.xlu0 %v2666_v2, %s2865_s29 }
 0x297   :  { %537 = vrot.lane.b32.xlu0 %v2668_v3, %s2865_s29  ;;  %v816_v3 = vpop.permute.xlu1 %815 }
 0x2f9   :  { %v322_v4 = vpop.permute.xlu0 %321 }
 0x2fa   :  { %325 = vst.msk [vmem:[#allocation2] sm:$0xf] %vm324_vm3, %v322_v4 }
 0x2fd   :  { %v404_v5 = vpop.permute.xlu0 %403 }
 0x2fe   :  { %2379 = vmatpush3.bf16.msra.mxu0 %v404_v5  ;;  %v820_v5 = vpop.permute.xlu1 %819 }
 0x2ff   :  { %2404 = vmatprep.subr.bf16.mxu0 %v2859_v0 }
 0x301   :  { %v326_v6 = vld [vmem:[#allocation2] sm:$0xf]  ;;  %v530_v10 = vpop.permute.xlu0 %529 }
 0x302   :  { %2381 = vmatmul.mubr.bf16.vlgmr.msra.gmra.mrb[4].mxu0 %v326_v6  ;;  %2385 = vmatpush3.bf16.msra.mxu1 %v530_v10  ;;  %v822_v6 = vpop.permute.xlu1 %821 }
 0x303   :  { %2420 = vmatprep.mubr.msk.bf16.mxu0 %vm2860_vm0, %v2859_v0  ;;  %2386 = vmatprep.subr.bf16.mxu1 %v2859_v0 }
 0x305   :  { %v534_v12 = vpop.permute.xlu0 %533 }
 0x306   :  { %2387 = vmatpush3.bf16.msra.mxu1 %v532_v11  ;;  %v2689_v11 = vld [vmem:[#allocation7 + $0x10] ss:$8 sps:$4 sm:$0xff]  }
 0x307   :  { %2388 = vmatprep.subr.bf16.mxu1 %v2859_v0  ;;  %951 = vrot.lane.b32.xlu1 %v2689_v11, %s2864_s28  ;;  %v2709_v11 = vld [vmem:[#allocation7 + $0x4] ss:$8 sps:$4 sm:$0xff]  }
 0x309   :  { %v538_v14 = vpop.permute.xlu0 %537 }
 0x30a   :  { %2389 = vmatpush3.bf16.msra.mxu1 %v534_v12 }
 0x30b   :  { %2390 = vmatprep.subr.bf16.mxu1 %v2859_v0 }
 0x30e   :  { %2391 = vmatpush3.bf16.msra.mxu1 %v536_v13 }
 0x30f   :  { %2392 = vmatprep.subr.bf16.mxu1 %v2859_v0 }
 0x312   :  { %2393 = vmatpush3.bf16.msra.mxu1 %v538_v14  ;;  %v2691_v14 = vld [vmem:[#allocation7 + $0x30] ss:$8 sps:$4 sm:$0xff]  }
 0x313   :  { %2394 = vmatprep.subr.bf16.mxu1 %v2859_v0  ;;  %955 = vrot.lane.b32.xlu1 %v2691_v14, %s2864_s28  ;;  %v2711_v14 = vld [vmem:[#allocation7 + $0x24] ss:$8 sps:$4 sm:$0xff]  }
 0x316   :  { %2395 = vmatpush3.bf16.msra.mxu1 %v540_v15 }
 0x317   :  { %2396 = vmatprep.subr.bf16.mxu1 %v2859_v0 }
 0x31a   :  { %2397 = vmatpush3.bf16.msra.mxu1 %v542_v16  ;;  %v2687_v16 = vld [vmem:[#allocation7 + $0x70] ss:$8 sps:$4 sm:$0xff]  }
 0x31b   :  { %2398 = vmatprep.subr.bf16.mxu1 %v2859_v0 }
 0x3d5   :  { %v450_v17 = vpop.f32.mrb[4].mxu0 }
 0x3d6   :  { %v451_v18 = vadd.f32 %v450_v17, %v414_v9  ;;  %v2382_v19 = vpop.f32.mrb[5].mxu0  ;;  %v2688_v17 = vld [vmem:[#allocation7] ss:$8 sps:$4 sm:$0xff]  }
 0x3d7   :  { %v453_v21 = vpop.f32.mrb[6].mxu0  ;;  %v2692_v19 = vld [vmem:[#allocation7 + $0x40] ss:$8 sps:$4 sm:$0xff]  }
 0x3d8   :  { %v456_v23 = vmax.f32 %v451_v18, 0.0  ;;  %v2383_v24 = vpop.f32.mrb[7].mxu0  ;;  %v2690_v18 = vld [vmem:[#allocation7 + $0x20] ss:$8 sps:$4 sm:$0xff]  }
 0x3d9   :  { %v2693_v24 = vld [vmem:[#allocation7 + $0x50] ss:$8 sps:$4 sm:$0xff]  }
 0x3da   :  { %v2182_v26 = vpack.c.bf16 %v456_v23, %v456_v23  ;;  %959 = vrot.lane.b32.xlu1 %v2693_v24, %s2864_s28 }
 0x3dc   :  { %461 = vrot.lane.b32.xlu0 %v2182_v26, %s2867_s5  ;;  %v2695_v26 = vld [vmem:[#allocation9] ss:$8 sps:$4 sm:$0xff]  }
 0x3de   :  { %961 = vrot.lane.b32.xlu1 %v2694_v25, %s2864_s28  ;;  %v2125_v25 = vld [vmem:[%s3246_s3] ss:$0 sm:$0xff] }
 0x3e0   :  { %543 = vrot.lane.b32.xlu0 %v2671_v27, %s2865_s29  ;;  %v2697_v27 = vld [vmem:[#allocation9 + $0x10] ss:$8 sps:$4 sm:$0xff]  }
 0x3e2   :  { %1094 = vrot.lane.b32.xlu1 %v2695_v26, %s2868_s6 }
 0x3e4   :  { %669 = vrot.lane.b32.xlu0 %v2672_v28, %s2867_s5  ;;  %v2699_v28 = vld [vmem:[#allocation9 + $0x20] ss:$8 sps:$4 sm:$0xff]  }
 0x3e6   :  { %1096 = vrot.lane.b32.xlu1 %v2697_v27, %s2868_s6 }
 0x3e8   :  { %673 = vrot.lane.b32.xlu0 %v2674_v29, %s2867_s5  ;;  %v2701_v29 = vld [vmem:[#allocation9 + $0x30] ss:$8 sps:$4 sm:$0xff]  }
 0x3ea   :  { %1098 = vrot.lane.b32.xlu1 %v2699_v28, %s2868_s6 }
 0x3ec   :  { %677 = vrot.lane.b32.xlu0 %v2676_v30, %s2867_s5  ;;  %v2703_v30 = vld [vmem:[#allocation9 + $0x40] ss:$8 sps:$4 sm:$0xff]  }
 0x3ee   :  { %1100 = vrot.lane.b32.xlu1 %v2701_v29, %s2868_s6 }
 0x3f2   :  { %1102 = vrot.lane.b32.xlu1 %v2703_v30, %s2868_s6 }
 0x3f6   :  { %973 = vrot.lane.b32.xlu1 %v2963_v20, %s2864_s28 }
 0x44e   :  { %v462_v31 = vpop.permute.xlu0 %461 }
 0x44f   :  { %465 = vst.msk [vmem:[#allocation2] sm:$0xf] %vm464_vm4, %v462_v31  ;;  %v834_v31 = vpop.permute.xlu1 %833 }
 0x452   :  { %v544_v32 = vpop.permute.xlu0 %543 }
 0x453   :  { %2399 = vmatpush3.bf16.msra.mxu1 %v544_v32  ;;  %v2706_v32 = vld [vmem:[#allocation7 + $0x50] ss:$8 sps:$4 sm:$0xff]   ;;  %v952_v34 = vpop.permute.xlu1 %951 }
 0x454   :  { %2424 = vmatprep.subr.bf16.mxu1 %v2859_v0  ;;  %1208 = vrot.lane.b32.xlu1 %v2706_v32, %s2868_s6 }
 0x456   :  { %v466_v33 = vld [vmem:[#allocation2] sm:$0xf]  ;;  %v670_v37 = vpop.permute.xlu0 %669 }
 0x457   :  { %2401 = vmatmul.mubr.bf16.vlgmr.msra.gmra.mrb[4].mxu1 %v466_v33  ;;  %2405 = vmatpush3.bf16.msra.mxu0 %v670_v37  ;;  %v2708_v37 = vld [vmem:[#allocation7 + $0x70] ss:$8 sps:$4 sm:$0xff]  }
 0x458   :  { %2440 = vmatprep.mubr.msk.bf16.mxu1 %vm2860_vm0, %v2859_v0  ;;  %2406 = vmatprep.subr.bf16.mxu0 %v2859_v0 }
 0x459   :  { %1210 = vrot.lane.b32.xlu1 %v2707_v35, %s2868_s6 }
 0x45a   :  { %v674_v39 = vpop.permute.xlu0 %673 }
 0x45b   :  { %2407 = vmatpush3.bf16.msra.mxu0 %v672_v38  ;;  %v956_v38 = vpop.permute.xlu1 %955 }
 0x45c   :  { %2408 = vmatprep.subr.bf16.mxu0 %v2859_v0 }
 0x45d   :  { %1212 = vrot.lane.b32.xlu1 %v2708_v37, %s2868_s6 }
 0x45e   :  { %v678_v41 = vpop.permute.xlu0 %677 }
 0x45f   :  { %2409 = vmatpush3.bf16.msra.mxu0 %v674_v39  ;;  %v960_v39 = vpop.permute.xlu1 %959 }
 0x460   :  { %2410 = vmatprep.subr.bf16.mxu0 %v2859_v0 }
 0x463   :  { %2411 = vmatpush3.bf16.msra.mxu0 %v676_v40  ;;  %v962_v40 = vpop.permute.xlu1 %961 }
 0x464   :  { %2412 = vmatprep.subr.bf16.mxu0 %v2859_v0 }
 0x467   :  { %2413 = vmatpush3.bf16.msra.mxu0 %v678_v41  ;;  %v1095_v41 = vpop.permute.xlu1 %1094 }
 0x468   :  { %2414 = vmatprep.subr.bf16.mxu0 %v2859_v0 }
 0x46b   :  { %2415 = vmatpush3.bf16.msra.mxu0 %v680_v42 }
 0x46c   :  { %2416 = vmatprep.subr.bf16.mxu0 %v2859_v0 }
 0x46f   :  { %2417 = vmatpush3.bf16.msra.mxu0 %v682_v43 }
 0x470   :  { %2418 = vmatprep.subr.bf16.mxu0 %v2859_v0 }
 0x52a   :  { %v590_v44 = vpop.f32.mrb[4].mxu1 }
 0x52b   :  { %v591_v45 = vadd.f32 %v590_v44, %v554_v36  ;;  %v2402_v46 = vpop.f32.mrb[5].mxu1 }
 0x52c   :  { %v593_v47 = vpop.f32.mrb[6].mxu1 }
 0x52d   :  { %v596_v49 = vmax.f32 %v591_v45, 0.0  ;;  %v2403_v50 = vpop.f32.mrb[7].mxu1  ;;  %v1097_v45 = vpop.permute.xlu1 %1096 }
 0x52f   :  { %v2183_v52 = vpack.c.bf16 %v596_v49, %v596_v49 }
 0x531   :  { %601 = vrot.lane.b32.xlu0 %v2183_v52, %s2865_s29  ;;  %v1099_v50 = vpop.permute.xlu1 %1098 }
 0x535   :  { %683 = vrot.lane.b32.xlu0 %v2679_v53, %s2867_s5  ;;  %v1101_v52 = vpop.permute.xlu1 %1100  ;;  %v2698_v53 = vld [vmem:[#allocation7] ss:$8 sps:$4 sm:$0xff]  }
 0x539   :  { %809 = vrot.lane.b32.xlu0 %v2680_v54, %s2866_s30  ;;  %v1103_v54 = vpop.permute.xlu1 %1102 }
 0x53d   :  { %813 = vrot.lane.b32.xlu0 %v2682_v55, %s2866_s30  ;;  %v2700_v55 = vld [vmem:[#allocation7 + $0x10] ss:$8 sps:$4 sm:$0xff]  }
 0x541   :  { %817 = vrot.lane.b32.xlu0 %v2684_v56, %s2866_s30  ;;  %v2702_v56 = vld [vmem:[#allocation7 + $0x20] ss:$8 sps:$4 sm:$0xff]  }
 0x5a3   :  { %v602_v57 = vpop.permute.xlu0 %601 }
 0x5a4   :  { %605 = vst.msk [vmem:[#allocation2] sm:$0xf] %vm604_vm5, %v602_v57  ;;  %v2704_v57 = vld [vmem:[#allocation7 + $0x30] ss:$8 sps:$4 sm:$0xff]  }
 0x5a7   :  { %v684_v58 = vpop.permute.xlu0 %683 }
 0x5a8   :  { %2419 = vmatpush3.bf16.msra.mxu0 %v684_v58  ;;  %v2705_v58 = vld [vmem:[#allocation7 + $0x40] ss:$8 sps:$4 sm:$0xff]  }
 0x5a9   :  { %2444 = vmatprep.subr.bf16.mxu0 %v2859_v0 }
 0x5ab   :  { %v606_v59 = vld [vmem:[#allocation2] sm:$0xf]  ;;  %v810_v63 = vpop.permute.xlu0 %809 }
 0x5ac   :  { %2421 = vmatmul.mubr.bf16.vlgmr.msra.gmra.mrb[8].mxu0 %v606_v59  ;;  %2425 = vmatpush3.bf16.msra.mxu1 %v810_v63  ;;  %v2717_v59 = vld [vmem:[#allocation9 + $0x50] ss:$8 sps:$4 sm:$0xff]  }
 0x5ad   :  { %2460 = vmatprep.mubr.msk.bf16.mxu0 %vm2860_vm0, %v2859_v0  ;;  %2426 = vmatprep.subr.bf16.mxu1 %v2859_v0 }
 0x5af   :  { %v814_v2 = vpop.permute.xlu0 %813 }
 0x5b0   :  { %2427 = vmatpush3.bf16.msra.mxu1 %v812_v1 }
 0x5b1   :  { %2428 = vmatprep.subr.bf16.mxu1 %v2859_v0 }
 0x5b3   :  { %v818_v4 = vpop.permute.xlu0 %817 }
 0x5b4   :  { %2429 = vmatpush3.bf16.msra.mxu1 %v814_v2 }
 0x5b5   :  { %2430 = vmatprep.subr.bf16.mxu1 %v2859_v0 }
 0x5b8   :  { %2431 = vmatpush3.bf16.msra.mxu1 %v816_v3 }
 0x5b9   :  { %2432 = vmatprep.subr.bf16.mxu1 %v2859_v0 }
 0x5bc   :  { %2433 = vmatpush3.bf16.msra.mxu1 %v818_v4 }
 0x5bd   :  { %2434 = vmatprep.subr.bf16.mxu1 %v2859_v0 }
 0x5c0   :  { %2435 = vmatpush3.bf16.msra.mxu1 %v820_v5  ;;  %v974_v5 = vpop.permute.xlu1 %973 }
 0x5c1   :  { %2436 = vmatprep.subr.bf16.mxu1 %v2859_v0 }
 0x5c4   :  { %2437 = vmatpush3.bf16.msra.mxu1 %v822_v6 }
 0x5c5   :  { %2438 = vmatprep.subr.bf16.mxu1 %v2859_v0 }
 0x67f   :  { %v730_v7 = vpop.f32.mrb[8].mxu0 }
 0x680   :  { %v731_v8 = vadd.f32 %v730_v7, %v694_v62  ;;  %v2422_v9 = vpop.f32.mrb[9].mxu0  ;;  %v1209_v7 = vpop.permute.xlu1 %1208 }
 0x681   :  { %v733_v10 = vpop.f32.mrb[10].mxu0 }
 0x682   :  { %v736_v12 = vmax.f32 %v731_v8, 0.0  ;;  %v2423_v13 = vpop.f32.mrb[11].mxu0 }
 0x683   :  { %v2710_v13 = vld [vmem:[#allocation7 + $0x14] ss:$8 sps:$4 sm:$0xff]  }
 0x684   :  { %v2184_v15 = vpack.c.bf16 %v736_v12, %v736_v12  ;;  %v1211_v9 = vpop.permute.xlu1 %1210 }
 0x686   :  { %741 = vrot.lane.b32.xlu0 %v2184_v15, %s2863_s27  ;;  %v2712_v15 = vld [vmem:[#allocation7 + $0x34] ss:$8 sps:$4 sm:$0xff]  }
 0x688   :  { %v1213_v10 = vpop.permute.xlu1 %1212 }
 0x68a   :  { %823 = vrot.lane.b32.xlu0 %v2687_v16, %s2866_s30  ;;  %v2713_v16 = vld [vmem:[#allocation7 + $0x44] ss:$8 sps:$4 sm:$0xff]  }
 0x68e   :  { %949 = vrot.lane.b32.xlu0 %v2688_v17, %s2864_s28  ;;  %v2714_v17 = vld [vmem:[#allocation7 + $0x54] ss:$8 sps:$4 sm:$0xff]  }
 0x692   :  { %953 = vrot.lane.b32.xlu0 %v2690_v18, %s2864_s28  ;;  %v2715_v18 = vld [vmem:[#allocation7 + $0x64] ss:$8 sps:$4 sm:$0xff]  }
 0x696   :  { %957 = vrot.lane.b32.xlu0 %v2692_v19, %s2864_s28  ;;  %v2716_v19 = vld [vmem:[#allocation7 + $0x74] ss:$8 sps:$4 sm:$0xff]  }
 0x6f8   :  { %v742_v21 = vpop.permute.xlu0 %741 }
 0x6f9   :  { %745 = vst.msk [vmem:[#allocation2] sm:$0xf] %vm744_vm6, %v742_v21 }
 0x6fc   :  { %v824_v22 = vpop.permute.xlu0 %823 }
 0x6fd   :  { %2439 = vmatpush3.bf16.msra.mxu1 %v824_v22 }
 0x6fe   :  { %2464 = vmatprep.subr.bf16.mxu1 %v2859_v0 }
 0x700   :  { %v746_v23 = vld [vmem:[#allocation2] sm:$0xf]  ;;  %v950_v33 = vpop.permute.xlu0 %949 }
 0x701   :  { %2441 = vmatmul.mubr.bf16.vlgmr.msra.gmra.mrb[8].mxu1 %v746_v23  ;;  %2445 = vmatpush3.bf16.msra.mxu0 %v950_v33 }
 0x702   :  { %2480 = vmatprep.mubr.msk.bf16.mxu1 %vm2860_vm0, %v2859_v0  ;;  %2446 = vmatprep.subr.bf16.mxu0 %v2859_v0 }
 0x703   :  { %2465 = vmatpush3.bf16.msra.mxu1 %v1095_v41  ;;  %v2720_v41 = vld [vmem:[#allocation9 + $0x4] ss:$8 sps:$4 sm:$0xff]  }
 0x704   :  { %v954_v36 = vpop.permute.xlu0 %953  ;;  %2466 = vmatprep.subr.bf16.mxu1 %v2859_v0 }
 0x705   :  { %2447 = vmatpush3.bf16.msra.mxu0 %v952_v34 }
 0x706   :  { %2448 = vmatprep.subr.bf16.mxu0 %v2859_v0 }
 0x707   :  { %2467 = vmatpush3.bf16.msra.mxu1 %v1097_v45  ;;  %v2724_v45 = vld [vmem:[#allocation9 + $0x44] ss:$8 sps:$4 sm:$0xff]  }
 0x708   :  { %v958_v20 = vpop.permute.xlu0 %957  ;;  %2468 = vmatprep.subr.bf16.mxu1 %v2859_v0 }
 0x709   :  { %2449 = vmatpush3.bf16.msra.mxu0 %v954_v36 }
 0x70a   :  { %2450 = vmatprep.subr.bf16.mxu0 %v2859_v0 }
 0x70b   :  { %2469 = vmatpush3.bf16.msra.mxu1 %v1099_v50 }
 0x70c   :  { %2470 = vmatprep.subr.bf16.mxu1 %v2859_v0 }
 0x70d   :  { %2451 = vmatpush3.bf16.msra.mxu0 %v956_v38 }
 0x70e   :  { %2452 = vmatprep.subr.bf16.mxu0 %v2859_v0 }
 0x70f   :  { %2471 = vmatpush3.bf16.msra.mxu1 %v1101_v52 }
 0x710   :  { %2472 = vmatprep.subr.bf16.mxu1 %v2859_v0 }
 0x711   :  { %2453 = vmatpush3.bf16.msra.mxu0 %v958_v20 }
 0x712   :  { %2454 = vmatprep.subr.bf16.mxu0 %v2859_v0 }
 0x713   :  { %2473 = vmatpush3.bf16.msra.mxu1 %v1103_v54 }
 0x714   :  { %2474 = vmatprep.subr.bf16.mxu1 %v2859_v0 }
 0x715   :  { %2455 = vmatpush3.bf16.msra.mxu0 %v960_v39 }
 0x716   :  { %2456 = vmatprep.subr.bf16.mxu0 %v2859_v0 }
 0x719   :  { %2457 = vmatpush3.bf16.msra.mxu0 %v962_v40 }
 0x71a   :  { %2458 = vmatprep.subr.bf16.mxu0 %v2859_v0 }
 0x7d4   :  { %v870_v42 = vpop.f32.mrb[8].mxu1 }
 0x7d5   :  { %v871_v43 = vadd.f32 %v870_v42, %v834_v31  ;;  %v2442_v44 = vpop.f32.mrb[9].mxu1  ;;  %v2721_v42 = vld [vmem:[#allocation9 + $0x14] ss:$8 sps:$4 sm:$0xff]  }
 0x7d6   :  { %v873_v46 = vpop.f32.mrb[10].mxu1  ;;  %v2723_v44 = vld [vmem:[#allocation9 + $0x34] ss:$8 sps:$4 sm:$0xff]  }
 0x7d7   :  { %v876_v47 = vmax.f32 %v871_v43, 0.0  ;;  %v2443_v48 = vpop.f32.mrb[11].mxu1  ;;  %v2722_v43 = vld [vmem:[#allocation9 + $0x24] ss:$8 sps:$4 sm:$0xff]   ;;  %v2725_v46 = vld [vmem:[#allocation9 + $0x54] ss:$8 sps:$4 sm:$0xff]  }
 0x7d8   :  { %v2727_v48 = vld [vmem:[#allocation9 + $0x74] ss:$8 sps:$4 sm:$0xff]  }
 0x7d9   :  { %v2185_v49 = vpack.c.bf16 %v876_v47, %v876_v47  ;;  %v2726_v47 = vld [vmem:[#allocation9 + $0x64] ss:$8 sps:$4 sm:$0xff]  }
 0x7db   :  { %881 = vrot.lane.b32.xlu0 %v2185_v49, %s2862_s2 }
 0x7df   :  { %963 = vrot.lane.b32.xlu0 %v2696_v51, %s2864_s28 }
 0x7e3   :  { %1198 = vrot.lane.b32.xlu0 %v2698_v53, %s2868_s6 }
 0x7e7   :  { %1200 = vrot.lane.b32.xlu0 %v2700_v55, %s2868_s6 }
 0x7eb   :  { %1202 = vrot.lane.b32.xlu0 %v2702_v56, %s2868_s6  ;;  %v2728_v56 = vld [vmem:[#allocation9 + $0x4] ss:$8 sps:$4 sm:$0xff]  }
 0x7ef   :  { %1204 = vrot.lane.b32.xlu0 %v2704_v57, %s2868_s6 }
 0x7f3   :  { %1206 = vrot.lane.b32.xlu0 %v2705_v58, %s2868_s6  ;;  %v2730_v58 = vld [vmem:[#allocation9 + $0x14] ss:$8 sps:$4 sm:$0xff]  }
 0x7f7   :  { %1104 = vrot.lane.b32.xlu0 %v2717_v59, %s2868_s6 }
 0x7fb   :  { %1106 = vrot.lane.b32.xlu0 %v2718_v60, %s2868_s6  ;;  %v2729_v60 = vld [vmem:[#allocation7 + $0x4] ss:$8 sps:$4 sm:$0xff]  }
 0x7ff   :  { %1108 = vrot.lane.b32.xlu0 %v2719_v61, %s2868_s6  ;;  %v2732_v61 = vld [vmem:[#allocation9 + $0x24] ss:$8 sps:$4 sm:$0xff]  }
 0x803   :  { %1268 = vrot.lane.b32.xlu0 %v2125_v25, %s2868_s6 }
 0x807   :  { %1583 = vrot.lane.b32.xlu0 %v2728_v56, %s2862_s2 }
 0x80b   :  { %1585 = vrot.lane.b32.xlu0 %v2730_v58, %s2862_s2 }
 0x80f   :  { %1587 = vrot.lane.b32.xlu0 %v2732_v61, %s2862_s2 }
 0x84d   :  { %v882_v62 = vpop.permute.xlu0 %881 }
 0x84e   :  { %885 = vst.msk [vmem:[#allocation2] sm:$0xf] %vm884_vm7, %v882_v62  ;;  %v2731_v62 = vld [vmem:[#allocation7 + $0x14] ss:$8 sps:$4 sm:$0xff]  }
 0x851   :  { %v964_v63 = vpop.permute.xlu0 %963 }
 0x852   :  { %2459 = vmatpush3.bf16.msra.mxu0 %v964_v63  ;;  %v2734_v63 = vld [vmem:[#allocation9 + $0x34] ss:$8 sps:$4 sm:$0xff]  }
 0x853   :  { %2484 = vmatprep.subr.bf16.mxu0 %v2859_v0  ;;  %1589 = vrot.lane.b32.xlu0 %v2734_v63, %s2862_s2 }
 0x855   :  { %v1199_v1 = vpop.permute.xlu0 %1198  ;;  %v886_v2 = vld [vmem:[#allocation2] sm:$0xf] }
 0x856   :  { %2461 = vmatmul.mubr.bf16.vlgmr.msra.gmra.mrb[12].mxu0 %v886_v2  ;;  %v1020_v12 = vld [vmem:[#allocation2] sm:$0xf]  ;;  %v2735_v2 = vld [vmem:[#allocation7 + $0x34] ss:$8 sps:$4 sm:$0xff]  }
 0x857   :  { %2485 = vmatpush3.bf16.msra.mxu0 %v1199_v1  ;;  %2500 = vmatprep.mubr.msk.bf16.mxu0 %vm2860_vm0, %v2859_v0  ;;  %v1282_v21 = vld [vmem:[#allocation2] sm:$0xf]  ;;  %v2733_v1 = vld [vmem:[#allocation7 + $0x24] ss:$8 sps:$4 sm:$0xff]  }
 0x858   :  { %2486 = vmatprep.subr.bf16.mxu0 %v2859_v0 }
 0x859   :  { %v1201_v3 = vpop.permute.xlu0 %1200 }
 0x85b   :  { %2487 = vmatpush3.bf16.msra.mxu0 %v1201_v3 }
 0x85c   :  { %2488 = vmatprep.subr.bf16.mxu0 %v2859_v0 }
 0x85d   :  { %v1203_v4 = vpop.permute.xlu0 %1202 }
 0x85f   :  { %2489 = vmatpush3.bf16.msra.mxu0 %v1203_v4 }
 0x860   :  { %2490 = vmatprep.subr.bf16.mxu0 %v2859_v0 }
 0x861   :  { %v1205_v6 = vpop.permute.xlu0 %1204 }
 0x863   :  { %2491 = vmatpush3.bf16.msra.mxu0 %v1205_v6  ;;  %v2737_v6 = vld [vmem:[#allocation7 + $0x44] ss:$8 sps:$4 sm:$0xff]  }
 0x864   :  { %2492 = vmatprep.subr.bf16.mxu0 %v2859_v0 }
 0x865   :  { %v1207_v8 = vpop.permute.xlu0 %1206 }
 0x867   :  { %2493 = vmatpush3.bf16.msra.mxu0 %v1207_v8  ;;  %v2739_v8 = vld [vmem:[#allocation7 + $0x54] ss:$8 sps:$4 sm:$0xff]  }
 0x868   :  { %2494 = vmatprep.subr.bf16.mxu0 %v2859_v0 }
 0x869   :  { %v1105_v22 = vpop.permute.xlu0 %1104 }
 0x86a   :  { %2475 = vmatpush3.bf16.msra.mxu1 %v1105_v22 }
 0x86b   :  { %2495 = vmatpush3.bf16.msra.mxu0 %v1209_v7  ;;  %2476 = vmatprep.subr.bf16.mxu1 %v2859_v0  ;;  %v2738_v7 = vld [vmem:[#allocation9 + $0x54] ss:$8 sps:$4 sm:$0xff]  }
 0x86c   :  { %2496 = vmatprep.subr.bf16.mxu0 %v2859_v0 }
 0x86d   :  { %v1107_v23 = vpop.permute.xlu0 %1106 }
 0x86e   :  { %2477 = vmatpush3.bf16.msra.mxu1 %v1107_v23 }
 0x86f   :  { %2497 = vmatpush3.bf16.msra.mxu0 %v1211_v9  ;;  %2478 = vmatprep.subr.bf16.mxu1 %v2859_v0  ;;  %v2740_v9 = vld [vmem:[#allocation9 + $0x64] ss:$8 sps:$4 sm:$0xff]  }
 0x870   :  { %2498 = vmatprep.subr.bf16.mxu0 %v2859_v0 }
 0x871   :  { %v1109_v24 = vpop.permute.xlu0 %1108 }
 0x872   :  { %2479 = vmatpush3.bf16.msra.mxu1 %v1109_v24 }
 0x873   :  { %2499 = vmatpush3.bf16.msra.mxu0 %v1213_v10  ;;  %2504 = vmatprep.subr.bf16.mxu1 %v2859_v0  ;;  %v2742_v10 = vld [vmem:[#allocation9 + $0x74] ss:$8 sps:$4 sm:$0xff]  }
 0x874   :  { %2524 = vmatprep.subr.bf16.mxu0 %v2859_v0 }
 0x875   :  { %v1269_v50 = vpop.permute.xlu0 %1268 }
 0x876   :  { %2501 = vmatmul.mubr.bf16.vlgmr.msra.gmra.mrb[16].mxu0 %v1020_v12 }
 0x877   :  { %2525 = vmatpush3.bf16.msra.mxu0 %v2709_v11  ;;  %2540 = vmatprep.mubr.msk.bf16.mxu0 %vm2860_vm0, %v2859_v0 }
 0x878   :  { %2526 = vmatprep.subr.bf16.mxu0 %v2859_v0 }
 0x879   :  { %v1584_v11 = vpop.permute.xlu0 %1583 }
 0x87b   :  { %2527 = vmatpush3.bf16.msra.mxu0 %v2710_v13  ;;  %v3167_v13 = vld [vmem:[%s3246_s3 + $0x1] ss:$0 sm:$0xff]  ;;  %s2869_s3 = smov [#allocation10]  }
 0x87c   :  { %2528 = vmatprep.subr.bf16.mxu0 %v2859_v0  ;;  %s2030_s11 = sshll.u32 %s2869_s3, 4  ;;  %s2031_s11 = int_to_ptr.vmem [resolvable:$true] %s2030_s11 }
 0x87d   :  { %s2826_s12 = scalar_lea.vmem %s2031_s11, 128  ;;  %p2831_p11 = scmp.lt.s32.totalorder %s2031_s11, %s2031_s11 }
 0x87e   :  { %p2827_p10 = scmp.ne.s32.totalorder %s2031_s11, %s2826_s12  ;;  %p2832_p12 = scmp.lt.s32.totalorder %s2826_s12, %s2826_s12 }
 0x87f   :  { %2529 = vmatpush3.bf16.msra.mxu0 %v2711_v14  ;;  %v1586_v14 = vpop.permute.xlu0 %1585 }
 0x880   :  { %2530 = vmatprep.subr.bf16.mxu0 %v2859_v0  ;;  %p2833_p13 = por %p2832_p12, %p2831_p11 }
 0x882   :  { %p2834_p0 = pnand %p2833_p13, %p2827_p10 }
 0x883   :  { %2531 = vmatpush3.bf16.msra.mxu0 %v2712_v15 }
 0x884   :  { %2532 = vmatprep.subr.bf16.mxu0 %v2859_v0 }
 0x887   :  { %2533 = vmatpush3.bf16.msra.mxu0 %v2713_v16  ;;  %v1588_v16 = vpop.permute.xlu0 %1587 }
 0x888   :  { %2534 = vmatprep.subr.bf16.mxu0 %v2859_v0 }
 0x88b   :  { %2535 = vmatpush3.bf16.msra.mxu0 %v2714_v17 }
 0x88c   :  { %2536 = vmatprep.subr.bf16.mxu0 %v2859_v0 }
 0x88f   :  { %2537 = vmatpush3.bf16.msra.mxu0 %v2715_v18 }
 0x890   :  { %2538 = vmatprep.subr.bf16.mxu0 %v2859_v0 }
 0x893   :  { %2539 = vmatpush3.bf16.msra.mxu0 %v2716_v19 }
 0x894   :  { %2564 = vmatprep.subr.bf16.mxu0 %v2859_v0 }
 0x896   :  { %2541 = vmatmul.mubr.bf16.vlgmr.msra.gmra.mrb[20].mxu0 %v1282_v21 }
 0x897   :  { %2580 = vmatprep.mubr.msk.bf16.mxu0 %vm2860_vm0, %v2859_v0 }
 0x8c5   :  { %v1590_v18 = vpop.permute.xlu0 %1589 }
 0x929   :  { %v1010_v26 = vpop.f32.mrb[12].mxu0 }
 0x92a   :  { %v1011_v27 = vadd.f32 %v1010_v26, %v974_v5  ;;  %v2462_v28 = vpop.f32.mrb[13].mxu0  ;;  %v2736_v5 = vld [vmem:[#allocation9 + $0x44] ss:$8 sps:$4 sm:$0xff]  }
 0x92b   :  { %v1013_v29 = vpop.f32.mrb[14].mxu0  ;;  %1591 = vrot.lane.b32.xlu0 %v2736_v5, %s2862_s2 }
 0x92c   :  { %v1016_v30 = vmax.f32 %v1011_v27, 0.0  ;;  %v2463_v31 = vpop.f32.mrb[15].mxu0 }
 0x92e   :  { %v1017_v32 = vpack.c.bf16 %v1016_v30, %v1016_v30 }
 0x92f   :  { %1593 = vrot.lane.b32.xlu0 %v2738_v7, %s2862_s2 }
 0x930   :  { %1019 = vst.msk [vmem:[#allocation3] sm:$0xf] %vm1018_vm8, %v1017_v32 }
 0x937   :  { %v1037_v33 = vld [vmem:[#allocation3] sm:$0xf] }
 0x938   :  { %2481 = vmatmul.mubr.bf16.vlgmr.msra.gmra.mrb[12].mxu1 %v1037_v33 }
 0x939   :  { %2520 = vmatprep.mubr.msk.bf16.mxu1 %vm2860_vm0, %v2859_v0  ;;  %2505 = vmatpush3.bf16.msra.mxu1 %v2720_v41  ;;  %v2748_v41 = vld [vmem:[#allocation9 + $0x24] ss:$8 sps:$4 sm:$0xff]  }
 0x93a   :  { %2506 = vmatprep.subr.bf16.mxu1 %v2859_v0 }
 0x93d   :  { %2507 = vmatpush3.bf16.msra.mxu1 %v2721_v42  ;;  %v2750_v42 = vld [vmem:[#allocation9 + $0x34] ss:$8 sps:$4 sm:$0xff]  }
 0x93e   :  { %2508 = vmatprep.subr.bf16.mxu1 %v2859_v0 }
 0x941   :  { %2509 = vmatpush3.bf16.msra.mxu1 %v2722_v43 }
 0x942   :  { %2510 = vmatprep.subr.bf16.mxu1 %v2859_v0 }
 0x945   :  { %2511 = vmatpush3.bf16.msra.mxu1 %v2723_v44 }
 0x946   :  { %2512 = vmatprep.subr.bf16.mxu1 %v2859_v0 }
 0x949   :  { %v1256_v34 = vpop.f32.mrb[16].mxu0  ;;  %2513 = vmatpush3.bf16.msra.mxu1 %v2724_v45 }
 0x94a   :  { %v2502_v35 = vpop.f32.mrb[17].mxu0  ;;  %2514 = vmatprep.subr.bf16.mxu1 %v2859_v0 }
 0x94b   :  { %v1259_v36 = vpop.f32.mrb[18].mxu0  ;;  %v2745_v35 = vld [vmem:[#allocation7 + $0x4] ss:$8 sps:$4 sm:$0xff]  }
 0x94c   :  { %v2503_v37 = vpop.f32.mrb[19].mxu0  ;;  %v2741_v36 = vld [vmem:[#allocation7 + $0x64] ss:$8 sps:$4 sm:$0xff]  }
 0x94d   :  { %2515 = vmatpush3.bf16.msra.mxu1 %v2725_v46  ;;  %v2747_v37 = vld [vmem:[#allocation7 + $0x14] ss:$8 sps:$4 sm:$0xff]  }
 0x94e   :  { %2516 = vmatprep.subr.bf16.mxu1 %v2859_v0 }
 0x951   :  { %2517 = vmatpush3.bf16.msra.mxu1 %v2726_v47  ;;  %v1509_v47 = vld [vmem:[#allocation2] sm:$0xf] }
 0x952   :  { %2518 = vmatprep.subr.bf16.mxu1 %v2859_v0 }
 0x955   :  { %2519 = vmatpush3.bf16.msra.mxu1 %v2727_v48  ;;  %v2751_v48 = vld [vmem:[#allocation7 + $0x34] ss:$8 sps:$4 sm:$0xff]  }
 0x956   :  { %2544 = vmatprep.subr.bf16.mxu1 %v2859_v0 }
 0x969   :  { %v3137_v38 = vpop.f32.mrb[20].mxu0 }
 0x96a   :  { %v2542_v20 = vpop.f32.mrb[21].mxu0 }
 0x96b   :  { %v1489_v39 = vpop.f32.mrb[22].mxu0  ;;  %v2749_v20 = vld [vmem:[#allocation7 + $0x24] ss:$8 sps:$4 sm:$0xff]  }
 0x96c   :  { %v2543_v40 = vpop.f32.mrb[23].mxu0  ;;  %v2744_v39 = vld [vmem:[#allocation9 + $0x4] ss:$8 sps:$4 sm:$0xff]  }
 0x96d   :  { %v2746_v40 = vld [vmem:[#allocation9 + $0x14] ss:$8 sps:$4 sm:$0xff]  }
 0x99d   :  { %v1592_v21 = vpop.permute.xlu0 %1591 }
 0x9a1   :  { %v1594_v23 = vpop.permute.xlu0 %1593 }
 0xa0b   :  { %v1152_v49 = vpop.f32.mrb[12].mxu1 }
 0xa0c   :  { %v1257_v51 = vadd.f32 %v1256_v34, %v1152_v49  ;;  %v2482_v52 = vpop.f32.mrb[13].mxu1  ;;  %v2752_v49 = vld [vmem:[#allocation9 + $0x44] ss:$8 sps:$4 sm:$0xff]  }
 0xa0d   :  { %v1155_v53 = vpop.f32.mrb[14].mxu1  ;;  %v2755_v52 = vld [vmem:[#allocation7 + $0x54] ss:$8 sps:$4 sm:$0xff]  }
 0xa0e   :  { %v1271_v54 = vadd.f32 %v1269_v50, %v1257_v51  ;;  %v2483_v55 = vpop.f32.mrb[15].mxu1  ;;  %v2753_v50 = vld [vmem:[#allocation7 + $0x44] ss:$8 sps:$4 sm:$0xff]   ;;  %v2754_v51 = vld [vmem:[#allocation9 + $0x54] ss:$8 sps:$4 sm:$0xff]  }
 0xa0f   :  { %v2756_v53 = vld [vmem:[#allocation9 + $0x64] ss:$8 sps:$4 sm:$0xff]   ;;  %v2758_v55 = vld [vmem:[#allocation9 + $0x74] ss:$8 sps:$4 sm:$0xff]  }
 0xa10   :  { %v1272_v57 = vmax.f32 %v1271_v54, 0.0 }
 0xa12   :  { %v2186_v59 = vpack.c.bf16 %v1272_v57, %v1272_v57 }
 0xa14   :  { %1277 = vrot.lane.b32.xlu1 %v2186_v59, %s2868_s6 }
 0xa18   :  { %1687 = vrot.lane.b32.xlu1 %v2729_v60, %s2862_s2 }
 0xa1c   :  { %1689 = vrot.lane.b32.xlu1 %v2731_v62, %s2862_s2 }
 0xa20   :  { %1691 = vrot.lane.b32.xlu1 %v2733_v1, %s2862_s2 }
 0xa24   :  { %1693 = vrot.lane.b32.xlu1 %v2735_v2, %s2862_s2 }
 0xa28   :  { %1695 = vrot.lane.b32.xlu1 %v2737_v6, %s2862_s2 }
 0xa2c   :  { %1697 = vrot.lane.b32.xlu1 %v2739_v8, %s2862_s2 }
 0xa30   :  { %1595 = vrot.lane.b32.xlu1 %v2740_v9, %s2862_s2 }
 0xa34   :  { %1597 = vrot.lane.b32.xlu1 %v2742_v10, %s2862_s2 }
 0xa38   :  { %1757 = vrot.lane.b32.xlu1 %v3167_v13, %s2862_s2 }
 0xa3c   :  { %1948 = vrot.lane.b32.xlu1 %v2745_v35, %s2863_s27 }
 0xa40   :  { %1950 = vrot.lane.b32.xlu1 %v2747_v37, %s2863_s27 }
 0xa44   :  { %1952 = vrot.lane.b32.xlu1 %v2749_v20, %s2863_s27 }
 0xa48   :  { %1954 = vrot.lane.b32.xlu1 %v2751_v48, %s2863_s27 }
 0xa4c   :  { %1956 = vrot.lane.b32.xlu1 %v2753_v50, %s2863_s27 }
 0xa50   :  { %1958 = vrot.lane.b32.xlu1 %v2755_v52, %s2863_s27 }
 0xa54   :  { %1856 = vrot.lane.b32.xlu1 %v2756_v53, %s2863_s27 }
 0xa58   :  { %1858 = vrot.lane.b32.xlu1 %v2758_v55, %s2863_s27 }
 0xa5c   :  { %2018 = vrot.lane.b32.xlu1 %v3167_v13, %s2863_s27 }
 0xa86   :  { %v1278_v3 = vpop.permute.xlu1 %1277 }
 0xa87   :  { %1281 = vst.msk [vmem:[#allocation3] sm:$0xf] %vm1280_vm9, %v1278_v3 }
 0xa8a   :  { %v1688_v12 = vpop.permute.xlu1 %1687 }
 0xa8b   :  { %2565 = vmatpush3.bf16.msra.mxu0 %v1688_v12 }
 0xa8c   :  { %2566 = vmatprep.subr.bf16.mxu0 %v2859_v0 }
 0xa8e   :  { %v1299_v4 = vld [vmem:[#allocation3] sm:$0xf]  ;;  %v1690_v15 = vpop.permute.xlu1 %1689 }
 0xa8f   :  { %2521 = vmatmul.mubr.bf16.vlgmr.msra.gmra.mrb[16].mxu1 %v1299_v4  ;;  %2567 = vmatpush3.bf16.msra.mxu0 %v1690_v15 }
 0xa90   :  { %2560 = vmatprep.mubr.msk.bf16.mxu1 %vm2860_vm0, %v2859_v0  ;;  %2545 = vmatpush3.bf16.msra.mxu1 %v1584_v11 }
 0xa91   :  { %2546 = vmatprep.subr.bf16.mxu1 %v2859_v0  ;;  %2568 = vmatprep.subr.bf16.mxu0 %v2859_v0 }
 0xa92   :  { %v1692_v17 = vpop.permute.xlu1 %1691 }
 0xa93   :  { %2569 = vmatpush3.bf16.msra.mxu0 %v1692_v17 }
 0xa94   :  { %2547 = vmatpush3.bf16.msra.mxu1 %v1586_v14  ;;  %2570 = vmatprep.subr.bf16.mxu0 %v2859_v0 }
 0xa95   :  { %2548 = vmatprep.subr.bf16.mxu1 %v2859_v0 }
 0xa96   :  { %v1694_v19 = vpop.permute.xlu1 %1693 }
 0xa97   :  { %2571 = vmatpush3.bf16.msra.mxu0 %v1694_v19  ;;  %v2757_v19 = vld [vmem:[#allocation7 + $0x64] ss:$8 sps:$4 sm:$0xff]  }
 0xa98   :  { %2549 = vmatpush3.bf16.msra.mxu1 %v1588_v16  ;;  %2572 = vmatprep.subr.bf16.mxu0 %v2859_v0 }
 0xa99   :  { %2550 = vmatprep.subr.bf16.mxu1 %v2859_v0 }
 0xa9a   :  { %v1696_v22 = vpop.permute.xlu1 %1695 }
 0xa9b   :  { %2573 = vmatpush3.bf16.msra.mxu0 %v1696_v22 }
 0xa9c   :  { %2551 = vmatpush3.bf16.msra.mxu1 %v1590_v18  ;;  %2574 = vmatprep.subr.bf16.mxu0 %v2859_v0 }
 0xa9d   :  { %2552 = vmatprep.subr.bf16.mxu1 %v2859_v0 }
 0xa9e   :  { %v1698_v24 = vpop.permute.xlu1 %1697 }
 0xa9f   :  { %2575 = vmatpush3.bf16.msra.mxu0 %v1698_v24 }
 0xaa0   :  { %2553 = vmatpush3.bf16.msra.mxu1 %v1592_v21  ;;  %2576 = vmatprep.subr.bf16.mxu0 %v2859_v0  ;;  %v2759_v21 = vld [vmem:[#allocation7 + $0x74] ss:$8 sps:$4 sm:$0xff]  }
 0xaa1   :  { %2554 = vmatprep.subr.bf16.mxu1 %v2859_v0 }
 0xaa2   :  { %v1596_v25 = vpop.permute.xlu1 %1595 }
 0xaa4   :  { %2555 = vmatpush3.bf16.msra.mxu1 %v1594_v23 }
 0xaa5   :  { %2556 = vmatprep.subr.bf16.mxu1 %v2859_v0 }
 0xaa6   :  { %v1598_v29 = vpop.permute.xlu1 %1597 }
 0xaa8   :  { %2557 = vmatpush3.bf16.msra.mxu1 %v1596_v25 }
 0xaa9   :  { %2558 = vmatprep.subr.bf16.mxu1 %v2859_v0 }
 0xaaa   :  { %v1758_v54 = vpop.permute.xlu1 %1757 }
 0xaac   :  { %2559 = vmatpush3.bf16.msra.mxu1 %v1598_v29 }
 0xaad   :  { %2584 = vmatprep.subr.bf16.mxu1 %v2859_v0 }
 0xaae   :  { %v1949_v57 = vpop.permute.xlu1 %1948 }
 0xab2   :  { %v1951_v59 = vpop.permute.xlu1 %1950 }
 0xab6   :  { %v1953_v61 = vpop.permute.xlu1 %1952 }
 0xaba   :  { %v1955_v63 = vpop.permute.xlu1 %1954 }
 0xabe   :  { %v1957_v2 = vpop.permute.xlu1 %1956 }
 0xac2   :  { %v1959_v4 = vpop.permute.xlu1 %1958 }
 0xac6   :  { %v1857_v6 = vpop.permute.xlu1 %1856 }
 0xb62   :  { %v1398_v26 = vpop.f32.mrb[16].mxu1 }
 0xb63   :  { %v1487_v27 = vadd.f32 %v3137_v38, %v1398_v26  ;;  %v2522_v28 = vpop.f32.mrb[17].mxu1  ;;  %v2743_v38 = vld [vmem:[#allocation7 + $0x74] ss:$8 sps:$4 sm:$0xff]   ;;  %v1770_v26 = vld [vmem:[#allocation2] sm:$0xf] }
 0xb64   :  { %v1401_v30 = vpop.f32.mrb[18].mxu1 }
 0xb65   :  { %v1499_v31 = vadd.f32 %v3167_v13, %v1487_v27  ;;  %v2523_v32 = vpop.f32.mrb[19].mxu1  ;;  %v1859_v13 = vpop.permute.xlu1 %1858 }
 0xb67   :  { %v1500_v33 = vmax.f32 %v1499_v31, 0.0 }
 0xb69   :  { %v2187_v34 = vpack.c.bf16 %v1500_v33, %v1500_v33  ;;  %v2019_v30 = vpop.permute.xlu1 %2018 }
 0xb6b   :  { %1505 = vrot.lane.b32.xlu0 %v2187_v34, %s2864_s28 }
 0xb6f   :  { %1699 = vrot.lane.b32.xlu0 %v2741_v36, %s2862_s2 }
 0xb73   :  { %1701 = vrot.lane.b32.xlu0 %v2743_v38, %s2862_s2 }
 0xb77   :  { %1844 = vrot.lane.b32.xlu0 %v2744_v39, %s2863_s27 }
 0xb7b   :  { %1846 = vrot.lane.b32.xlu0 %v2746_v40, %s2863_s27 }
 0xb7f   :  { %1848 = vrot.lane.b32.xlu0 %v2748_v41, %s2863_s27 }
 0xb83   :  { %1850 = vrot.lane.b32.xlu0 %v2750_v42, %s2863_s27 }
 0xb87   :  { %1852 = vrot.lane.b32.xlu0 %v2752_v49, %s2863_s27 }
 0xb8b   :  { %1854 = vrot.lane.b32.xlu0 %v2754_v51, %s2863_s27 }
 0xbdd   :  { %v1506_v43 = vpop.permute.xlu0 %1505 }
 0xbde   :  { %1508 = vst.msk [vmem:[#allocation3] sm:$0xf] %vm184_vm2, %v1506_v43 }
 0xbe1   :  { %v1700_v44 = vpop.permute.xlu0 %1699 }
 0xbe2   :  { %2577 = vmatpush3.bf16.msra.mxu0 %v1700_v44 }
 0xbe3   :  { %2578 = vmatprep.subr.bf16.mxu0 %v2859_v0 }
 0xbe5   :  { %v1702_v45 = vpop.permute.xlu0 %1701  ;;  %v1526_v46 = vld [vmem:[#allocation3] sm:$0xf] }
 0xbe6   :  { %2561 = vmatmul.mubr.bf16.vlgmr.msra.gmra.mrb[20].mxu1 %v1526_v46  ;;  %2579 = vmatpush3.bf16.msra.mxu0 %v1702_v45 }
 0xbe7   :  { %2604 = vmatprep.subr.bf16.mxu0 %v2859_v0  ;;  %2600 = vmatprep.mubr.msk.bf16.mxu1 %vm2860_vm0, %v2859_v0 }
 0xbe9   :  { %2581 = vmatmul.mubr.bf16.vlgmr.msra.gmra.mrb[24].mxu0 %v1509_v47  ;;  %v1845_v56 = vpop.permute.xlu0 %1844 }
 0xbea   :  { %2620 = vmatprep.mubr.msk.bf16.mxu0 %vm2860_vm0, %v2859_v0  ;;  %2585 = vmatpush3.bf16.msra.mxu1 %v1845_v56 }
 0xbeb   :  { %2605 = vmatpush3.bf16.msra.mxu0 %v1949_v57  ;;  %2586 = vmatprep.subr.bf16.mxu1 %v2859_v0 }
 0xbec   :  { %2606 = vmatprep.subr.bf16.mxu0 %v2859_v0 }
 0xbed   :  { %v1847_v58 = vpop.permute.xlu0 %1846 }
 0xbee   :  { %2587 = vmatpush3.bf16.msra.mxu1 %v1847_v58 }
 0xbef   :  { %2607 = vmatpush3.bf16.msra.mxu0 %v1951_v59  ;;  %2588 = vmatprep.subr.bf16.mxu1 %v2859_v0 }
 0xbf0   :  { %2608 = vmatprep.subr.bf16.mxu0 %v2859_v0 }
 0xbf1   :  { %v1849_v60 = vpop.permute.xlu0 %1848 }
 0xbf2   :  { %2589 = vmatpush3.bf16.msra.mxu1 %v1849_v60 }
 0xbf3   :  { %2609 = vmatpush3.bf16.msra.mxu0 %v1953_v61  ;;  %2590 = vmatprep.subr.bf16.mxu1 %v2859_v0 }
 0xbf4   :  { %2610 = vmatprep.subr.bf16.mxu0 %v2859_v0 }
 0xbf5   :  { %v1851_v62 = vpop.permute.xlu0 %1850 }
 0xbf6   :  { %2591 = vmatpush3.bf16.msra.mxu1 %v1851_v62 }
 0xbf7   :  { %2592 = vmatprep.subr.bf16.mxu1 %v2859_v0  ;;  %2611 = vmatpush3.bf16.msra.mxu0 %v1955_v63 }
 0xbf8   :  { %2612 = vmatprep.subr.bf16.mxu0 %v2859_v0 }
 0xbf9   :  { %v1853_v1 = vpop.permute.xlu0 %1852 }
 0xbfa   :  { %2593 = vmatpush3.bf16.msra.mxu1 %v1853_v1 }
 0xbfb   :  { %2594 = vmatprep.subr.bf16.mxu1 %v2859_v0  ;;  %2613 = vmatpush3.bf16.msra.mxu0 %v1957_v2 }
 0xbfc   :  { %2614 = vmatprep.subr.bf16.mxu0 %v2859_v0 }
 0xbfd   :  { %v1855_v3 = vpop.permute.xlu0 %1854 }
 0xbfe   :  { %2595 = vmatpush3.bf16.msra.mxu1 %v1855_v3 }
 0xbff   :  { %2596 = vmatprep.subr.bf16.mxu1 %v2859_v0  ;;  %2615 = vmatpush3.bf16.msra.mxu0 %v1959_v4 }
 0xc00   :  { %2616 = vmatprep.subr.bf16.mxu0 %v2859_v0 }
 0xc02   :  { %2597 = vmatpush3.bf16.msra.mxu1 %v1857_v6 }
 0xc03   :  { %2598 = vmatprep.subr.bf16.mxu1 %v2859_v0 }
 0xc06   :  { %2599 = vmatpush3.bf16.msra.mxu1 %v1859_v13 }
 0xcb9   :  { %v1641_v5 = vpop.f32.mrb[20].mxu1 }
 0xcba   :  { %v2562_v7 = vpop.f32.mrb[21].mxu1 }
 0xcbb   :  { %v1644_v8 = vpop.f32.mrb[22].mxu1 }
 0xcbc   :  { %v2563_v9 = vpop.f32.mrb[23].mxu1  ;;  %v1745_v10 = vpop.f32.mrb[24].mxu0 }
 0xcbd   :  { %v1746_v11 = vadd.f32 %v1745_v10, %v1641_v5  ;;  %v2582_v12 = vpop.f32.mrb[25].mxu0 }
 0xcbe   :  { %v1748_v14 = vpop.f32.mrb[26].mxu0 }
 0xcbf   :  { %v1760_v15 = vadd.f32 %v1758_v54, %v1746_v11  ;;  %v2583_v16 = vpop.f32.mrb[27].mxu0 }
 0xcc1   :  { %v1761_v17 = vmax.f32 %v1760_v15, 0.0 }
 0xcc3   :  { %v2188_v18 = vpack.c.bf16 %v1761_v17, %v1761_v17 }
 0xcc5   :  { %1766 = vrot.lane.b32.xlu0 %v2188_v18, %s2866_s30 }
 0xcc9   :  { %1960 = vrot.lane.b32.xlu0 %v2757_v19, %s2863_s27 }
 0xccd   :  { %1962 = vrot.lane.b32.xlu0 %v2759_v21, %s2863_s27 }
 0xd37   :  { %v1767_v22 = vpop.permute.xlu0 %1766 }
 0xd38   :  { %1769 = vst.msk [vmem:[#allocation3] sm:$0xf] %vm324_vm3, %v1767_v22 }
 0xd3b   :  { %v1961_v23 = vpop.permute.xlu0 %1960 }
 0xd3c   :  { %2617 = vmatpush3.bf16.msra.mxu0 %v1961_v23 }
 0xd3d   :  { %2618 = vmatprep.subr.bf16.mxu0 %v2859_v0 }
 0xd3f   :  { %v1963_v24 = vpop.permute.xlu0 %1962  ;;  %v1787_v25 = vld [vmem:[#allocation3] sm:$0xf] }
 0xd40   :  { %2601 = vmatmul.mubr.bf16.vlgmr.msra.gmra.mrb[24].mxu1 %v1787_v25  ;;  %2619 = vmatpush3.bf16.msra.mxu0 %v1963_v24 }
 0xd43   :  { %2621 = vmatmul.mubr.bf16.vlgmr.msra.gmra.mrb[28].mxu0 %v1770_v26 }
 0xe13   :  { %v1902_v27 = vpop.f32.mrb[24].mxu1 }
 0xe14   :  { %v2602_v28 = vpop.f32.mrb[25].mxu1 }
 0xe15   :  { %v1905_v29 = vpop.f32.mrb[26].mxu1 }
 0xe16   :  { %v2603_v31 = vpop.f32.mrb[27].mxu1  ;;  %v2006_v32 = vpop.f32.mrb[28].mxu0 }
 0xe17   :  { %v2007_v33 = vadd.f32 %v2006_v32, %v1902_v27  ;;  %v2622_v34 = vpop.f32.mrb[29].mxu0 }
 0xe18   :  { %v2009_v35 = vpop.f32.mrb[30].mxu0 }
 0xe19   :  { %v2021_v36 = vadd.f32 %v2019_v30, %v2007_v33  ;;  %v2623_v0 = vpop.f32.mrb[31].mxu0 }
 0xe1b   :  { %2023 = vst.msk [vmem:[#allocation10] sm:$0xff] %vm2022_vm10, %v2021_v36 }
 0xe1c   :  { %2837 = shalt.err (!%p2834_p0)
}
 0xe1d   :  { %s2838_s14 = scalar_lea.hbm %s3247_s4, 128 }
 0xe1e   :  { %p2839_p1 = scmp.ne.s32.totalorder %s3247_s4, %s2838_s14  ;;  %p2842_p2 = scmp.lt.u32.totalorder %s2838_s14, %s3247_s4 }
 0xe20   :  { %p2844_p3 = pnand %p2842_p2, %p2839_p1 }
 0xe22   :  { %2847 = shalt.err (!%p2844_p3)
}
 0xe23   :  { %2033 = dma.vmem_to_hbm [thread:$0]  %s2031_s11, 128, %s3247_s4, [#allocation6]  }
 0xe24   :  { %2852 = dma.done.wait [#allocation6], 128  }
 0xe25   :  { %2853 = vsyncadd [#allocation6], 4294967168 }
 0xe26   :  { %2037 = vsyncpa [#allocation5], 1 }
 0xe27   :  { %2038 = vsyncpa [#allocation8], 1 }
 0xe28   :  { %2039 = vsyncpa [#allocation6], 1 }

</bundles_post_ra>
